<compile_context>
chip_gen: v7x
topology: tpu7x:2x2x1
jax: 0.10.0
libtpu: 0.0.40
codegen_flags: <defaults>
</compile_context>

<pallas_src>
import functools

import jax
import jax.numpy as jnp
from jax import lax
from jax.experimental import pallas as pl
from jax.experimental.pallas import tpu as pltpu


_LANE = 128   # time-axis padding multiple (lane-dense stores)
_SUB = 16     # channel padding multiple (bf16 sublane packing friendly)


def _round_up(x, m):
    return (x + m - 1) // m * m


def _vmem_limit_bytes(block_bytes, work_bytes):
    """Scoped-VMEM limit: double-buffered grid blocks + in-kernel temporaries,
    2x slack, clamped to [32 MiB, 64 MiB] (valid on v5e/v6e/v7x)."""
    est = 2 * block_bytes + work_bytes
    return int(min(max(2 * est, 32 * 2**20), 64 * 2**20))


# --------------------------- parameter folding ----------------------------
def _fold_block_params(p, c_in_pad, c_out_pad, eps=1e-5):
    """Zero-pad channels, fold conv bias + eval BatchNorm into per-channel
    scale/shift, build fused-tap conv weights (bf16 MXU operands)."""
    C_out, C_in, K = p["w0"].shape

    def padv(v, c, fill=0.0):
        return jnp.pad(v.astype(jnp.float32), (0, c - v.shape[0]),
                       constant_values=fill)

    w0 = jnp.pad(p["w0"].astype(jnp.float32),
                 ((0, c_out_pad - C_out), (0, c_in_pad - C_in), (0, 0)))
    w1 = jnp.pad(p["w1"].astype(jnp.float32),
                 ((0, c_out_pad - C_out), (0, c_out_pad - C_out), (0, 0)))
    wo = jnp.pad(p["wo"][:, :, 0].astype(jnp.float32),
                 ((0, c_out_pad - C_out), (0, c_out_pad - C_out)))

    b0 = padv(p["b0"], c_out_pad); b1 = padv(p["b1"], c_out_pad)
    g0 = padv(p["g0"], c_out_pad); g1 = padv(p["g1"], c_out_pad)
    be0 = padv(p["be0"], c_out_pad); be1 = padv(p["be1"], c_out_pad)
    m0 = padv(p["m0"], c_out_pad); m1 = padv(p["m1"], c_out_pad)
    v0 = padv(p["v0"], c_out_pad, 1.0); v1 = padv(p["v1"], c_out_pad, 1.0)

    # bn(conv + b) = conv*s + ((b - m)*s + beta),  s = gamma / sqrt(v + eps).
    # Padded channels get gamma=0 -> s=0, t=0 -> stay exactly zero after ReLU.
    s0 = g0 / jnp.sqrt(v0 + eps); t0 = (b0 - m0) * s0 + be0
    s1 = g1 / jnp.sqrt(v1 + eps); t1 = (b1 - m1) * s1 + be1

    # Fused-tap weights (C_out, K*C_in), column order (k, c_in) matching the
    # in-kernel sublane concat of the K causally shifted activation copies.
    w0cat = jnp.transpose(w0, (0, 2, 1)).reshape(c_out_pad, K * c_in_pad)
    w1cat = jnp.transpose(w1, (0, 2, 1)).reshape(c_out_pad, K * c_out_pad)

    col = lambda v: v.reshape(c_out_pad, 1)
    return dict(
        w0cat=w0cat.astype(jnp.bfloat16), s0=col(s0), t0=col(t0),
        w1cat=w1cat.astype(jnp.bfloat16), s1=col(s1), t1=col(t1),
        wo=wo.astype(jnp.bfloat16), bo=col(padv(p["bo"], c_out_pad)))


# ----------------------------- kernel bodies ------------------------------
def _causal_taps(a, shifts, T):
    """K causally shifted copies of a (C, T): tap_k[:, t] = a[:, t - shifts[k]]
    (zero for t < shifts[k]).  One zero fill + K static lane slices per conv."""
    pds = max(shifts)
    if pds == 0:
        return [a for _ in shifts]
    zeros = jnp.zeros(a.shape[:-1] + (pds,), a.dtype)
    apad = jnp.concatenate([zeros, a], axis=-1)          # (C, pds + T)
    return [apad[:, pds - s: pds - s + T] for s in shifts]


def _resblock_body(x_bf, w0, s0, t0, w1, s1, t1, wo, bo, shifts, T):
    """Eval-mode ResBlock on a (C, T) tile: causal conv0 -> bn0 -> relu ->
    causal conv1 -> bn1 -> relu -> h + conv_out(h).  Dropout1d == identity.
    Matmul operands bf16, accumulation + BN/ReLU/residual epilogue f32."""
    xcat = jnp.concatenate(_causal_taps(x_bf, shifts, T), axis=0)
    h0 = jnp.maximum(
        jnp.dot(w0, xcat, preferred_element_type=jnp.float32) * s0 + t0, 0.0)
    hcat = jnp.concatenate(_causal_taps(h0.astype(jnp.bfloat16), shifts, T),
                           axis=0)
    h1 = jnp.maximum(
        jnp.dot(w1, hcat, preferred_element_type=jnp.float32) * s1 + t1, 0.0)
    x1 = h1 + jnp.dot(wo, h1.astype(jnp.bfloat16),
                      preferred_element_type=jnp.float32) + bo
    return x1, h1


def _make_network_kernel(C_pad, T_pad, t_last, K, dilations):
    """One fused kernel for conv_in + all ResBlocks + last-step shortcut sum."""

    def kernel(x_ref, win_ref, bin_ref, w0_ref, s0_ref, t0_ref,
               w1_ref, s1_ref, t1_ref, wo_ref, bo_ref, feat_ref):
        # conv_in (1x1): channels on sublanes, time lane-dense.
        z = jnp.dot(win_ref[...], x_ref[0],
                    preferred_element_type=jnp.float32) + bin_ref[...]
        feat = jnp.zeros((C_pad, 1), jnp.float32)
        # Static unroll over the blocks: activations stay resident in VMEM, no
        # per-block pallas_call launches, no inter-block HBM traffic.
        for i, dil in enumerate(dilations):
            shifts = [(K - 1 - k) * dil for k in range(K)]
            z, h1 = _resblock_body(
                z.astype(jnp.bfloat16),
                w0_ref[i], s0_ref[i], t0_ref[i],
                w1_ref[i], s1_ref[i], t1_ref[i],
                wo_ref[i], bo_ref[i], shifts, T_pad)
            # return_sequences=False: only the last ORIGINAL time column of the
            # shortcut sum feeds the heads -> never write full h back to HBM.
            feat = feat + h1[:, t_last:t_last + 1]
        feat_ref[0] = feat

    return kernel


def _make_resblock_kernel(T_pad, K, dil):
    shifts = [(K - 1 - k) * dil for k in range(K)]

    def kernel(x_ref, w0_ref, s0_ref, t0_ref, w1_ref, s1_ref, t1_ref,
               wo_ref, bo_ref, x1_ref, h_ref):
        x1, h1 = _resblock_body(
            x_ref[0], w0_ref[...], s0_ref[...], t0_ref[...],
            w1_ref[...], s1_ref[...], t1_ref[...],
            wo_ref[...], bo_ref[...], shifts, T_pad)
        x1_ref[0] = x1
        h_ref[0] = h1

    return kernel


# ------------------------- module-level wrappers --------------------------
def distpt_forward(x_ncw, params, *, kernel_size, dilations):
    """DistPT_Network.forward, eval mode.  x_ncw: (N, in_ch, T) -> (do, po)."""
    N, in_ch, T = x_ncw.shape
    tcn = params["win"].shape[0]
    K = kernel_size
    dilations = tuple(dilations)
    C_pad = _round_up(tcn, _SUB)
    in_pad = _round_up(in_ch, _SUB)
    T_pad = _round_up(T, _LANE)

    # Keep NCW layout; pad channels/time once; bf16 matmul operands.
    xp = jnp.pad(x_ncw.astype(jnp.float32),
                 ((0, 0), (0, in_pad - in_ch), (0, T_pad - T))
                 ).astype(jnp.bfloat16)
    win = jnp.pad(params["win"][:, :, 0].astype(jnp.float32),
                  ((0, C_pad - tcn), (0, in_pad - in_ch))).astype(jnp.bfloat16)
    bin_ = jnp.pad(params["bin"].astype(jnp.float32),
                   (0, C_pad - tcn)).reshape(C_pad, 1)

    fps = [_fold_block_params(bp, C_pad, C_pad) for bp in params["blocks"]]
    stack = lambda k: jnp.stack([fp[k] for fp in fps], axis=0)
    blk = [stack(k) for k in ("w0cat", "s0", "t0", "w1cat", "s1", "t1",
                              "wo", "bo")]

    kern = _make_network_kernel(C_pad, T_pad, T - 1, K, dilations)

    const2 = lambda n: (0, 0)
    const3 = lambda n: (0, 0, 0)
    in_specs = ([pl.BlockSpec((1, in_pad, T_pad), lambda n: (n, 0, 0)),
                 pl.BlockSpec(win.shape, const2),
                 pl.BlockSpec(bin_.shape, const2)]
                + [pl.BlockSpec(a.shape, const3) for a in blk])

    param_bytes = sum(int(a.size) * a.dtype.itemsize for a in [win, bin_] + blk)
    pds_max = (K - 1) * max(dilations)
    work = (2 * K * C_pad * (T_pad + pds_max) * 2      # xcat / hcat (bf16)
            + 4 * C_pad * T_pad * 4)                   # z / h0 / h1 / x1 (f32)
    vlim = _vmem_limit_bytes(in_pad * T_pad * 2 + C_pad * 4 + param_bytes, work)

    feat = pl.pallas_call(
        kern,
        out_shape=jax.ShapeDtypeStruct((N, C_pad, 1), jnp.float32),
        grid_spec=pltpu.PrefetchScalarGridSpec(
            num_scalar_prefetch=0,
            grid=(N,),                           # one sample per grid step
            in_specs=in_specs,
            out_specs=pl.BlockSpec((1, C_pad, 1), lambda n: (n, 0, 0)),
        ),
        compiler_params=pltpu.CompilerParams(
            dimension_semantics=("parallel",),   # shardable across v7x's 2 TCs
            vmem_limit_bytes=vlim),
    )(xp, win, bin_, *blk)

    feat = feat[:, :tcn, 0]
    # Tiny epilogue (2x Linear(tcn -> 2)): negligible work, left to XLA.
    do = feat @ params["wd"].T + params["bd"]
    po = feat @ params["wp"].T + params["bp"]
    return do, po


def resblock_forward(x_ncw, p, *, kernel_size, dilation):
    """Standalone eval-mode ResBlock.forward (full sequences x1, h)."""
    N, C_in, T = x_ncw.shape
    C_out = p["w0"].shape[0]
    c_in_pad = _round_up(C_in, _SUB)
    c_out_pad = _round_up(C_out, _SUB)
    T_pad = _round_up(T, _LANE)

    xp = jnp.pad(x_ncw.astype(jnp.float32),
                 ((0, 0), (0, c_in_pad - C_in), (0, T_pad - T))
                 ).astype(jnp.bfloat16)
    fp = _fold_block_params(p, c_in_pad, c_out_pad)
    prm = [fp[k] for k in ("w0cat", "s0", "t0", "w1cat", "s1", "t1",
                           "wo", "bo")]

    const2 = lambda n: (0, 0)
    in_specs = ([pl.BlockSpec((1, c_in_pad, T_pad), lambda n: (n, 0, 0))]
                + [pl.BlockSpec(a.shape, const2) for a in prm])

    param_bytes = sum(int(a.size) * a.dtype.itemsize for a in prm)
    pds = (kernel_size - 1) * dilation
    cmax = max(c_in_pad, c_out_pad)
    work = (2 * kernel_size * cmax * (T_pad + pds) * 2
            + 4 * c_out_pad * T_pad * 4)
    vlim = _vmem_limit_bytes(
        c_in_pad * T_pad * 2 + 2 * c_out_pad * T_pad * 4 + param_bytes, work)

    kern = _make_resblock_kernel(T_pad, kernel_size, dilation)
    x1, h = pl.pallas_call(
        kern,
        out_shape=(jax.ShapeDtypeStruct((N, c_out_pad, T_pad), jnp.float32),
                   jax.ShapeDtypeStruct((N, c_out_pad, T_pad), jnp.float32)),
        grid_spec=pltpu.PrefetchScalarGridSpec(
            num_scalar_prefetch=0,
            grid=(N,),
            in_specs=in_specs,
            out_specs=[pl.BlockSpec((1, c_out_pad, T_pad), lambda n: (n, 0, 0)),
                       pl.BlockSpec((1, c_out_pad, T_pad), lambda n: (n, 0, 0))],
        ),
        compiler_params=pltpu.CompilerParams(
            dimension_semantics=("parallel",),
            vmem_limit_bytes=vlim),
    )(xp, *prm)
    return x1[:, :C_out, :T], h[:, :C_out, :T]


# -------------------- pure-JAX reference (verification) --------------------
def _ref_causal_conv(x, w, b, dil):
    K = w.shape[2]
    pds = (K - 1) * dil
    y = lax.conv_general_dilated(
        x, w, window_strides=(1,), padding=[(pds, 0)], rhs_dilation=(dil,),
        dimension_numbers=("NCH", "OIH", "NCH"),
        precision=lax.Precision.HIGHEST)
    return y + b[None, :, None]


def _ref_resblock(x, p, *, kernel_size, dilation):
    eps = 1e-5

    def bn(inp, g, be, m, v):
        return ((inp - m[None, :, None]) / jnp.sqrt(v[None, :, None] + eps)
                * g[None, :, None] + be[None, :, None])

    h = jax.nn.relu(bn(_ref_causal_conv(x, p["w0"], p["b0"], dilation),
                       p["g0"], p["be0"], p["m0"], p["v0"]))
    h = jax.nn.relu(bn(_ref_causal_conv(h, p["w1"], p["b1"], dilation),
                       p["g1"], p["be1"], p["m1"], p["v1"]))
    x1 = h + _ref_causal_conv(h, p["wo"], p["bo"], 1)
    return x1, h


def _ref_distpt(x, params, *, kernel_size, dilations):
    y = lax.conv_general_dilated(
        x, params["win"], window_strides=(1,), padding=[(0, 0)],
        dimension_numbers=("NCH", "OIH", "NCH"),
        precision=lax.Precision.HIGHEST) + params["bin"][None, :, None]
    sc_sum = jnp.zeros_like(y)
    cur = y
    for p, d in zip(params["blocks"], dilations):
        cur, sc = _ref_resblock(cur, p, kernel_size=kernel_size, dilation=d)
        sc_sum = sc_sum + sc
    feat = sc_sum[:, :, -1]
    do = feat @ params["wd"].T + params["bd"]
    po = feat @ params["wp"].T + params["bp"]
    return do, po


# ------------------------------- demo / test -------------------------------
def _init_params(key, in_ch, tcn, K, n_blocks):
    keys = iter(jax.random.split(key, 256))

    def nrm(shape, scale):
        return scale * jax.random.normal(next(keys), shape, jnp.float32)

    def blk():
        return dict(
            w0=nrm((tcn, tcn, K), 0.1), b0=nrm((tcn,), 0.1),
            g0=1.0 + nrm((tcn,), 0.1), be0=nrm((tcn,), 0.1),
            m0=nrm((tcn,), 0.05),
            v0=0.8 + 0.4 * jax.random.uniform(next(keys), (tcn,), jnp.float32),
            w1=nrm((tcn, tcn, K), 0.1), b1=nrm((tcn,), 0.1),
            g1=1.0 + nrm((tcn,), 0.1), be1=nrm((tcn,), 0.1),
            m1=nrm((tcn,), 0.05),
            v1=0.8 + 0.4 * jax.random.uniform(next(keys), (tcn,), jnp.float32),
            wo=nrm((tcn, tcn, 1), 0.1), bo=nrm((tcn,), 0.1),
        )

    return dict(
        win=nrm((tcn, in_ch, 1), 0.3), bin=nrm((tcn,), 0.1),
        blocks=[blk() for _ in range(n_blocks)],
        wd=nrm((2, tcn), 0.1), bd=nrm((2,), 0.1),
        wp=nrm((2, tcn), 0.1), bp=nrm((2,), 0.1),
    )


if __name__ == "__main__":
    # Small shapes consistent with module defaults (tcn_channels=20,
    # kernel_size=6); reduced dilation list for a compact test
    # (dil=32 exercises taps beyond the sequence length).
    N, in_ch, T = 4, 3, 128
    tcn, K = 20, 6
    dilations = [1, 2, 8, 32]

    params = _init_params(jax.random.PRNGKey(0), in_ch, tcn, K, len(dilations))
    x = jax.random.normal(jax.random.PRNGKey(7), (N, in_ch, T), jnp.float32)

    fwd = jax.jit(functools.partial(distpt_forward, kernel_size=K,
                                    dilations=tuple(dilations)))
    do, po = fwd(x, params)
    jax.block_until_ready((do, po))

    do_ref, po_ref = _ref_distpt(x, params, kernel_size=K, dilations=dilations)
    assert do.shape == (N, 2) and po.shape == (N, 2)
    # bf16 MXU operands with f32 accumulation -> small relative error budget.
    assert jnp.allclose(do, do_ref, atol=7.5e-2, rtol=7.5e-2), "lin_dist mismatch"
    assert jnp.allclose(po, po_ref, atol=7.5e-2, rtol=7.5e-2), "lin_ptrvl mismatch"

    # Standalone ResBlock check (full sequences) against the reference.
    xb = jax.random.normal(jax.random.PRNGKey(11), (N, tcn, T), jnp.float32)
    rb = jax.jit(functools.partial(resblock_forward, kernel_size=K, dilation=4))
    x1, h = rb(xb, params["blocks"][1])
    jax.block_until_ready((x1, h))
    x1_ref, h_ref = _ref_resblock(xb, params["blocks"][1],
                                  kernel_size=K, dilation=4)
    assert x1.shape == (N, tcn, T) and h.shape == (N, tcn, T)
    assert jnp.allclose(x1, x1_ref, atol=5e-2, rtol=5e-2), "ResBlock x1 mismatch"
    assert jnp.allclose(h, h_ref, atol=5e-2, rtol=5e-2), "ResBlock h mismatch"

    print("KERNEL_OK")
</pallas_src>

<mosaic_0001>
module attributes {stable_mosaic.version = 11 : i64} {
  func.func @kernel(%arg0: i32, %arg1: memref<1x16x128xbf16, #tpu.memory_space<vmem>>, %arg2: memref<32x16xbf16, #tpu.memory_space<vmem>>, %arg3: memref<32x1xf32, #tpu.memory_space<vmem>>, %arg4: memref<4x32x192xbf16, #tpu.memory_space<vmem>>, %arg5: memref<4x32x1xf32, #tpu.memory_space<vmem>>, %arg6: memref<4x32x1xf32, #tpu.memory_space<vmem>>, %arg7: memref<4x32x192xbf16, #tpu.memory_space<vmem>>, %arg8: memref<4x32x1xf32, #tpu.memory_space<vmem>>, %arg9: memref<4x32x1xf32, #tpu.memory_space<vmem>>, %arg10: memref<4x32x32xbf16, #tpu.memory_space<vmem>>, %arg11: memref<4x32x1xf32, #tpu.memory_space<vmem>>, %arg12: memref<1x32x1xf32, #tpu.memory_space<vmem>>) attributes {dimension_semantics = [#tpu.dimension_semantics<parallel>], iteration_bounds = array<i64: 4>, scalar_prefetch = 0 : i64, scratch_operands = 0 : i64, tpu.core_type = #tpu.core_type<tc>, window_params = [{transform_indices = @transform_0, window_bounds = array<i64: 1, 16, 128>}, {pipeline_mode = #tpu.pipeline_mode<synchronous>, transform_indices = @transform_1, window_bounds = array<i64: 32, 16>}, {pipeline_mode = #tpu.pipeline_mode<synchronous>, transform_indices = @transform_2, window_bounds = array<i64: 32, 1>}, {pipeline_mode = #tpu.pipeline_mode<synchronous>, transform_indices = @transform_3, window_bounds = array<i64: 4, 32, 192>}, {pipeline_mode = #tpu.pipeline_mode<synchronous>, transform_indices = @transform_4, window_bounds = array<i64: 4, 32, 1>}, {pipeline_mode = #tpu.pipeline_mode<synchronous>, transform_indices = @transform_5, window_bounds = array<i64: 4, 32, 1>}, {pipeline_mode = #tpu.pipeline_mode<synchronous>, transform_indices = @transform_6, window_bounds = array<i64: 4, 32, 192>}, {pipeline_mode = #tpu.pipeline_mode<synchronous>, transform_indices = @transform_7, window_bounds = array<i64: 4, 32, 1>}, {pipeline_mode = #tpu.pipeline_mode<synchronous>, transform_indices = @transform_8, window_bounds = array<i64: 4, 32, 1>}, {pipeline_mode = #tpu.pipeline_mode<synchronous>, transform_indices = @transform_9, window_bounds = array<i64: 4, 32, 32>}, {pipeline_mode = #tpu.pipeline_mode<synchronous>, transform_indices = @transform_10, window_bounds = array<i64: 4, 32, 1>}, {transform_indices = @transform_11, window_bounds = array<i64: 1, 32, 1>}]} {
    %c0 = arith.constant 0 : index
    %c0_0 = arith.constant 0 : index
    %0 = vector.load %arg2[%c0, %c0_0] : memref<32x16xbf16, #tpu.memory_space<vmem>>, vector<32x16xbf16>
    %c0_1 = arith.constant 0 : index
    %c0_2 = arith.constant 0 : index
    %c0_3 = arith.constant 0 : index
    %1 = vector.load %arg1[%c0_1, %c0_2, %c0_3] : memref<1x16x128xbf16, #tpu.memory_space<vmem>>, vector<1x16x128xbf16>
    %2 = vector.shape_cast %1 : vector<1x16x128xbf16> to vector<16x128xbf16>
    %cst = arith.constant dense<0.000000e+00> : vector<32x128xf32>
    %3 = tpu.matmul %0, %2, %cst {dimension_numbers = #tpu.dot_dimension_numbers<[1], [0], [0], [1], [0, 0, 1, 1], [], []>} : vector<32x16xbf16>, vector<16x128xbf16>, vector<32x128xf32> -> vector<32x128xf32>
    %c0_4 = arith.constant 0 : index
    %c0_5 = arith.constant 0 : index
    %4 = vector.load %arg3[%c0_4, %c0_5] : memref<32x1xf32, #tpu.memory_space<vmem>>, vector<32x1xf32>
    %5 = vector.broadcast %4 : vector<32x1xf32> to vector<32x128xf32>
    %6 = arith.addf %3, %5 : vector<32x128xf32>
    %cst_6 = arith.constant 0.000000e+00 : f32
    %7 = vector.broadcast %cst_6 : f32 to vector<32x1xf32>
    %8 = arith.truncf %6 : vector<32x128xf32> to vector<32x128xbf16>
    %c0_7 = arith.constant 0 : index
    %c0_8 = arith.constant 0 : index
    %c0_9 = arith.constant 0 : index
    %9 = vector.load %arg4[%c0_7, %c0_8, %c0_9] : memref<4x32x192xbf16, #tpu.memory_space<vmem>>, vector<1x32x192xbf16>
    %10 = vector.shape_cast %9 : vector<1x32x192xbf16> to vector<32x192xbf16>
    %c0_10 = arith.constant 0 : index
    %c0_11 = arith.constant 0 : index
    %c0_12 = arith.constant 0 : index
    %11 = vector.load %arg5[%c0_10, %c0_11, %c0_12] : memref<4x32x1xf32, #tpu.memory_space<vmem>>, vector<1x32x1xf32>
    %12 = vector.shape_cast %11 : vector<1x32x1xf32> to vector<32x1xf32>
    %c0_13 = arith.constant 0 : index
    %c0_14 = arith.constant 0 : index
    %c0_15 = arith.constant 0 : index
    %13 = vector.load %arg6[%c0_13, %c0_14, %c0_15] : memref<4x32x1xf32, #tpu.memory_space<vmem>>, vector<1x32x1xf32>
    %14 = vector.shape_cast %13 : vector<1x32x1xf32> to vector<32x1xf32>
    %c0_16 = arith.constant 0 : index
    %c0_17 = arith.constant 0 : index
    %c0_18 = arith.constant 0 : index
    %15 = vector.load %arg7[%c0_16, %c0_17, %c0_18] : memref<4x32x192xbf16, #tpu.memory_space<vmem>>, vector<1x32x192xbf16>
    %16 = vector.shape_cast %15 : vector<1x32x192xbf16> to vector<32x192xbf16>
    %c0_19 = arith.constant 0 : index
    %c0_20 = arith.constant 0 : index
    %c0_21 = arith.constant 0 : index
    %17 = vector.load %arg8[%c0_19, %c0_20, %c0_21] : memref<4x32x1xf32, #tpu.memory_space<vmem>>, vector<1x32x1xf32>
    %18 = vector.shape_cast %17 : vector<1x32x1xf32> to vector<32x1xf32>
    %c0_22 = arith.constant 0 : index
    %c0_23 = arith.constant 0 : index
    %c0_24 = arith.constant 0 : index
    %19 = vector.load %arg9[%c0_22, %c0_23, %c0_24] : memref<4x32x1xf32, #tpu.memory_space<vmem>>, vector<1x32x1xf32>
    %20 = vector.shape_cast %19 : vector<1x32x1xf32> to vector<32x1xf32>
    %c0_25 = arith.constant 0 : index
    %c0_26 = arith.constant 0 : index
    %c0_27 = arith.constant 0 : index
    %21 = vector.load %arg10[%c0_25, %c0_26, %c0_27] : memref<4x32x32xbf16, #tpu.memory_space<vmem>>, vector<1x32x32xbf16>
    %22 = vector.shape_cast %21 : vector<1x32x32xbf16> to vector<32x32xbf16>
    %c0_28 = arith.constant 0 : index
    %c0_29 = arith.constant 0 : index
    %c0_30 = arith.constant 0 : index
    %23 = vector.load %arg11[%c0_28, %c0_29, %c0_30] : memref<4x32x1xf32, #tpu.memory_space<vmem>>, vector<1x32x1xf32>
    %24 = vector.shape_cast %23 : vector<1x32x1xf32> to vector<32x1xf32>
    %cst_31 = arith.constant 0.000000e+00 : bf16
    %25 = vector.broadcast %cst_31 : bf16 to vector<32x5xbf16>
    %26 = tpu.concatenate %25, %8 in 1 : vector<32x5xbf16>, vector<32x128xbf16> -> vector<32x133xbf16>
    %27 = vector.extract_strided_slice %26 {offsets = [0, 0], sizes = [32, 128], strides = [1, 1]} : vector<32x133xbf16> to vector<32x128xbf16>
    %28 = vector.extract_strided_slice %26 {offsets = [0, 1], sizes = [32, 128], strides = [1, 1]} : vector<32x133xbf16> to vector<32x128xbf16>
    %29 = vector.extract_strided_slice %26 {offsets = [0, 2], sizes = [32, 128], strides = [1, 1]} : vector<32x133xbf16> to vector<32x128xbf16>
    %30 = vector.extract_strided_slice %26 {offsets = [0, 3], sizes = [32, 128], strides = [1, 1]} : vector<32x133xbf16> to vector<32x128xbf16>
    %31 = vector.extract_strided_slice %26 {offsets = [0, 4], sizes = [32, 128], strides = [1, 1]} : vector<32x133xbf16> to vector<32x128xbf16>
    %32 = vector.extract_strided_slice %26 {offsets = [0, 5], sizes = [32, 128], strides = [1, 1]} : vector<32x133xbf16> to vector<32x128xbf16>
    %33 = tpu.concatenate %27, %28, %29, %30, %31, %32 in 0 : vector<32x128xbf16>, vector<32x128xbf16>, vector<32x128xbf16>, vector<32x128xbf16>, vector<32x128xbf16>, vector<32x128xbf16> -> vector<192x128xbf16>
    %cst_32 = arith.constant dense<0.000000e+00> : vector<32x128xf32>
    %34 = tpu.matmul %10, %33, %cst_32 {dimension_numbers = #tpu.dot_dimension_numbers<[1], [0], [0], [1], [0, 0, 1, 1], [], []>} : vector<32x192xbf16>, vector<192x128xbf16>, vector<32x128xf32> -> vector<32x128xf32>
    %35 = vector.broadcast %12 : vector<32x1xf32> to vector<32x128xf32>
    %36 = arith.mulf %34, %35 : vector<32x128xf32>
    %37 = vector.broadcast %14 : vector<32x1xf32> to vector<32x128xf32>
    %38 = arith.addf %36, %37 : vector<32x128xf32>
    %cst_33 = arith.constant 0.000000e+00 : f32
    %39 = vector.broadcast %cst_33 : f32 to vector<32x128xf32>
    %40 = arith.maximumf %38, %39 : vector<32x128xf32>
    %41 = arith.truncf %40 : vector<32x128xf32> to vector<32x128xbf16>
    %cst_34 = arith.constant 0.000000e+00 : bf16
    %42 = vector.broadcast %cst_34 : bf16 to vector<32x5xbf16>
    %43 = tpu.concatenate %42, %41 in 1 : vector<32x5xbf16>, vector<32x128xbf16> -> vector<32x133xbf16>
    %44 = vector.extract_strided_slice %43 {offsets = [0, 0], sizes = [32, 128], strides = [1, 1]} : vector<32x133xbf16> to vector<32x128xbf16>
    %45 = vector.extract_strided_slice %43 {offsets = [0, 1], sizes = [32, 128], strides = [1, 1]} : vector<32x133xbf16> to vector<32x128xbf16>
    %46 = vector.extract_strided_slice %43 {offsets = [0, 2], sizes = [32, 128], strides = [1, 1]} : vector<32x133xbf16> to vector<32x128xbf16>
    %47 = vector.extract_strided_slice %43 {offsets = [0, 3], sizes = [32, 128], strides = [1, 1]} : vector<32x133xbf16> to vector<32x128xbf16>
    %48 = vector.extract_strided_slice %43 {offsets = [0, 4], sizes = [32, 128], strides = [1, 1]} : vector<32x133xbf16> to vector<32x128xbf16>
    %49 = vector.extract_strided_slice %43 {offsets = [0, 5], sizes = [32, 128], strides = [1, 1]} : vector<32x133xbf16> to vector<32x128xbf16>
    %50 = tpu.concatenate %44, %45, %46, %47, %48, %49 in 0 : vector<32x128xbf16>, vector<32x128xbf16>, vector<32x128xbf16>, vector<32x128xbf16>, vector<32x128xbf16>, vector<32x128xbf16> -> vector<192x128xbf16>
    %cst_35 = arith.constant dense<0.000000e+00> : vector<32x128xf32>
    %51 = tpu.matmul %16, %50, %cst_35 {dimension_numbers = #tpu.dot_dimension_numbers<[1], [0], [0], [1], [0, 0, 1, 1], [], []>} : vector<32x192xbf16>, vector<192x128xbf16>, vector<32x128xf32> -> vector<32x128xf32>
    %52 = vector.broadcast %18 : vector<32x1xf32> to vector<32x128xf32>
    %53 = arith.mulf %51, %52 : vector<32x128xf32>
    %54 = vector.broadcast %20 : vector<32x1xf32> to vector<32x128xf32>
    %55 = arith.addf %53, %54 : vector<32x128xf32>
    %cst_36 = arith.constant 0.000000e+00 : f32
    %56 = vector.broadcast %cst_36 : f32 to vector<32x128xf32>
    %57 = arith.maximumf %55, %56 : vector<32x128xf32>
    %58 = arith.truncf %57 : vector<32x128xf32> to vector<32x128xbf16>
    %cst_37 = arith.constant dense<0.000000e+00> : vector<32x128xf32>
    %59 = tpu.matmul %22, %58, %cst_37 {dimension_numbers = #tpu.dot_dimension_numbers<[1], [0], [0], [1], [0, 0, 1, 1], [], []>} : vector<32x32xbf16>, vector<32x128xbf16>, vector<32x128xf32> -> vector<32x128xf32>
    %60 = arith.addf %57, %59 : vector<32x128xf32>
    %61 = vector.broadcast %24 : vector<32x1xf32> to vector<32x128xf32>
    %62 = arith.addf %60, %61 : vector<32x128xf32>
    %63 = vector.extract_strided_slice %57 {offsets = [0, 127], sizes = [32, 1], strides = [1, 1]} : vector<32x128xf32> to vector<32x1xf32>
    %64 = arith.addf %7, %63 : vector<32x1xf32>
    %65 = arith.truncf %62 : vector<32x128xf32> to vector<32x128xbf16>
    %c1 = arith.constant 1 : index
    %c0_38 = arith.constant 0 : index
    %c0_39 = arith.constant 0 : index
    %66 = vector.load %arg4[%c1, %c0_38, %c0_39] : memref<4x32x192xbf16, #tpu.memory_space<vmem>>, vector<1x32x192xbf16>
    %67 = vector.shape_cast %66 : vector<1x32x192xbf16> to vector<32x192xbf16>
    %c1_40 = arith.constant 1 : index
    %c0_41 = arith.constant 0 : index
    %c0_42 = arith.constant 0 : index
    %68 = vector.load %arg5[%c1_40, %c0_41, %c0_42] : memref<4x32x1xf32, #tpu.memory_space<vmem>>, vector<1x32x1xf32>
    %69 = vector.shape_cast %68 : vector<1x32x1xf32> to vector<32x1xf32>
    %c1_43 = arith.constant 1 : index
    %c0_44 = arith.constant 0 : index
    %c0_45 = arith.constant 0 : index
    %70 = vector.load %arg6[%c1_43, %c0_44, %c0_45] : memref<4x32x1xf32, #tpu.memory_space<vmem>>, vector<1x32x1xf32>
    %71 = vector.shape_cast %70 : vector<1x32x1xf32> to vector<32x1xf32>
    %c1_46 = arith.constant 1 : index
    %c0_47 = arith.constant 0 : index
    %c0_48 = arith.constant 0 : index
    %72 = vector.load %arg7[%c1_46, %c0_47, %c0_48] : memref<4x32x192xbf16, #tpu.memory_space<vmem>>, vector<1x32x192xbf16>
    %73 = vector.shape_cast %72 : vector<1x32x192xbf16> to vector<32x192xbf16>
    %c1_49 = arith.constant 1 : index
    %c0_50 = arith.constant 0 : index
    %c0_51 = arith.constant 0 : index
    %74 = vector.load %arg8[%c1_49, %c0_50, %c0_51] : memref<4x32x1xf32, #tpu.memory_space<vmem>>, vector<1x32x1xf32>
    %75 = vector.shape_cast %74 : vector<1x32x1xf32> to vector<32x1xf32>
    %c1_52 = arith.constant 1 : index
    %c0_53 = arith.constant 0 : index
    %c0_54 = arith.constant 0 : index
    %76 = vector.load %arg9[%c1_52, %c0_53, %c0_54] : memref<4x32x1xf32, #tpu.memory_space<vmem>>, vector<1x32x1xf32>
    %77 = vector.shape_cast %76 : vector<1x32x1xf32> to vector<32x1xf32>
    %c1_55 = arith.constant 1 : index
    %c0_56 = arith.constant 0 : index
    %c0_57 = arith.constant 0 : index
    %78 = vector.load %arg10[%c1_55, %c0_56, %c0_57] : memref<4x32x32xbf16, #tpu.memory_space<vmem>>, vector<1x32x32xbf16>
    %79 = vector.shape_cast %78 : vector<1x32x32xbf16> to vector<32x32xbf16>
    %c1_58 = arith.constant 1 : index
    %c0_59 = arith.constant 0 : index
    %c0_60 = arith.constant 0 : index
    %80 = vector.load %arg11[%c1_58, %c0_59, %c0_60] : memref<4x32x1xf32, #tpu.memory_space<vmem>>, vector<1x32x1xf32>
    %81 = vector.shape_cast %80 : vector<1x32x1xf32> to vector<32x1xf32>
    %cst_61 = arith.constant 0.000000e+00 : bf16
    %82 = vector.broadcast %cst_61 : bf16 to vector<32x10xbf16>
    %83 = tpu.concatenate %82, %65 in 1 : vector<32x10xbf16>, vector<32x128xbf16> -> vector<32x138xbf16>
    %84 = vector.extract_strided_slice %83 {offsets = [0, 0], sizes = [32, 128], strides = [1, 1]} : vector<32x138xbf16> to vector<32x128xbf16>
    %85 = vector.extract_strided_slice %83 {offsets = [0, 2], sizes = [32, 128], strides = [1, 1]} : vector<32x138xbf16> to vector<32x128xbf16>
    %86 = vector.extract_strided_slice %83 {offsets = [0, 4], sizes = [32, 128], strides = [1, 1]} : vector<32x138xbf16> to vector<32x128xbf16>
    %87 = vector.extract_strided_slice %83 {offsets = [0, 6], sizes = [32, 128], strides = [1, 1]} : vector<32x138xbf16> to vector<32x128xbf16>
    %88 = vector.extract_strided_slice %83 {offsets = [0, 8], sizes = [32, 128], strides = [1, 1]} : vector<32x138xbf16> to vector<32x128xbf16>
    %89 = vector.extract_strided_slice %83 {offsets = [0, 10], sizes = [32, 128], strides = [1, 1]} : vector<32x138xbf16> to vector<32x128xbf16>
    %90 = tpu.concatenate %84, %85, %86, %87, %88, %89 in 0 : vector<32x128xbf16>, vector<32x128xbf16>, vector<32x128xbf16>, vector<32x128xbf16>, vector<32x128xbf16>, vector<32x128xbf16> -> vector<192x128xbf16>
    %cst_62 = arith.constant dense<0.000000e+00> : vector<32x128xf32>
    %91 = tpu.matmul %67, %90, %cst_62 {dimension_numbers = #tpu.dot_dimension_numbers<[1], [0], [0], [1], [0, 0, 1, 1], [], []>} : vector<32x192xbf16>, vector<192x128xbf16>, vector<32x128xf32> -> vector<32x128xf32>
    %92 = vector.broadcast %69 : vector<32x1xf32> to vector<32x128xf32>
    %93 = arith.mulf %91, %92 : vector<32x128xf32>
    %94 = vector.broadcast %71 : vector<32x1xf32> to vector<32x128xf32>
    %95 = arith.addf %93, %94 : vector<32x128xf32>
    %cst_63 = arith.constant 0.000000e+00 : f32
    %96 = vector.broadcast %cst_63 : f32 to vector<32x128xf32>
    %97 = arith.maximumf %95, %96 : vector<32x128xf32>
    %98 = arith.truncf %97 : vector<32x128xf32> to vector<32x128xbf16>
    %cst_64 = arith.constant 0.000000e+00 : bf16
    %99 = vector.broadcast %cst_64 : bf16 to vector<32x10xbf16>
    %100 = tpu.concatenate %99, %98 in 1 : vector<32x10xbf16>, vector<32x128xbf16> -> vector<32x138xbf16>
    %101 = vector.extract_strided_slice %100 {offsets = [0, 0], sizes = [32, 128], strides = [1, 1]} : vector<32x138xbf16> to vector<32x128xbf16>
    %102 = vector.extract_strided_slice %100 {offsets = [0, 2], sizes = [32, 128], strides = [1, 1]} : vector<32x138xbf16> to vector<32x128xbf16>
    %103 = vector.extract_strided_slice %100 {offsets = [0, 4], sizes = [32, 128], strides = [1, 1]} : vector<32x138xbf16> to vector<32x128xbf16>
    %104 = vector.extract_strided_slice %100 {offsets = [0, 6], sizes = [32, 128], strides = [1, 1]} : vector<32x138xbf16> to vector<32x128xbf16>
    %105 = vector.extract_strided_slice %100 {offsets = [0, 8], sizes = [32, 128], strides = [1, 1]} : vector<32x138xbf16> to vector<32x128xbf16>
    %106 = vector.extract_strided_slice %100 {offsets = [0, 10], sizes = [32, 128], strides = [1, 1]} : vector<32x138xbf16> to vector<32x128xbf16>
    %107 = tpu.concatenate %101, %102, %103, %104, %105, %106 in 0 : vector<32x128xbf16>, vector<32x128xbf16>, vector<32x128xbf16>, vector<32x128xbf16>, vector<32x128xbf16>, vector<32x128xbf16> -> vector<192x128xbf16>
    %cst_65 = arith.constant dense<0.000000e+00> : vector<32x128xf32>
    %108 = tpu.matmul %73, %107, %cst_65 {dimension_numbers = #tpu.dot_dimension_numbers<[1], [0], [0], [1], [0, 0, 1, 1], [], []>} : vector<32x192xbf16>, vector<192x128xbf16>, vector<32x128xf32> -> vector<32x128xf32>
    %109 = vector.broadcast %75 : vector<32x1xf32> to vector<32x128xf32>
    %110 = arith.mulf %108, %109 : vector<32x128xf32>
    %111 = vector.broadcast %77 : vector<32x1xf32> to vector<32x128xf32>
    %112 = arith.addf %110, %111 : vector<32x128xf32>
    %cst_66 = arith.constant 0.000000e+00 : f32
    %113 = vector.broadcast %cst_66 : f32 to vector<32x128xf32>
    %114 = arith.maximumf %112, %113 : vector<32x128xf32>
    %115 = arith.truncf %114 : vector<32x128xf32> to vector<32x128xbf16>
    %cst_67 = arith.constant dense<0.000000e+00> : vector<32x128xf32>
    %116 = tpu.matmul %79, %115, %cst_67 {dimension_numbers = #tpu.dot_dimension_numbers<[1], [0], [0], [1], [0, 0, 1, 1], [], []>} : vector<32x32xbf16>, vector<32x128xbf16>, vector<32x128xf32> -> vector<32x128xf32>
    %117 = arith.addf %114, %116 : vector<32x128xf32>
    %118 = vector.broadcast %81 : vector<32x1xf32> to vector<32x128xf32>
    %119 = arith.addf %117, %118 : vector<32x128xf32>
    %120 = vector.extract_strided_slice %114 {offsets = [0, 127], sizes = [32, 1], strides = [1, 1]} : vector<32x128xf32> to vector<32x1xf32>
    %121 = arith.addf %64, %120 : vector<32x1xf32>
    %122 = arith.truncf %119 : vector<32x128xf32> to vector<32x128xbf16>
    %c2 = arith.constant 2 : index
    %c0_68 = arith.constant 0 : index
    %c0_69 = arith.constant 0 : index
    %123 = vector.load %arg4[%c2, %c0_68, %c0_69] : memref<4x32x192xbf16, #tpu.memory_space<vmem>>, vector<1x32x192xbf16>
    %124 = vector.shape_cast %123 : vector<1x32x192xbf16> to vector<32x192xbf16>
    %c2_70 = arith.constant 2 : index
    %c0_71 = arith.constant 0 : index
    %c0_72 = arith.constant 0 : index
    %125 = vector.load %arg5[%c2_70, %c0_71, %c0_72] : memref<4x32x1xf32, #tpu.memory_space<vmem>>, vector<1x32x1xf32>
    %126 = vector.shape_cast %125 : vector<1x32x1xf32> to vector<32x1xf32>
    %c2_73 = arith.constant 2 : index
    %c0_74 = arith.constant 0 : index
    %c0_75 = arith.constant 0 : index
    %127 = vector.load %arg6[%c2_73, %c0_74, %c0_75] : memref<4x32x1xf32, #tpu.memory_space<vmem>>, vector<1x32x1xf32>
    %128 = vector.shape_cast %127 : vector<1x32x1xf32> to vector<32x1xf32>
    %c2_76 = arith.constant 2 : index
    %c0_77 = arith.constant 0 : index
    %c0_78 = arith.constant 0 : index
    %129 = vector.load %arg7[%c2_76, %c0_77, %c0_78] : memref<4x32x192xbf16, #tpu.memory_space<vmem>>, vector<1x32x192xbf16>
    %130 = vector.shape_cast %129 : vector<1x32x192xbf16> to vector<32x192xbf16>
    %c2_79 = arith.constant 2 : index
    %c0_80 = arith.constant 0 : index
    %c0_81 = arith.constant 0 : index
    %131 = vector.load %arg8[%c2_79, %c0_80, %c0_81] : memref<4x32x1xf32, #tpu.memory_space<vmem>>, vector<1x32x1xf32>
    %132 = vector.shape_cast %131 : vector<1x32x1xf32> to vector<32x1xf32>
    %c2_82 = arith.constant 2 : index
    %c0_83 = arith.constant 0 : index
    %c0_84 = arith.constant 0 : index
    %133 = vector.load %arg9[%c2_82, %c0_83, %c0_84] : memref<4x32x1xf32, #tpu.memory_space<vmem>>, vector<1x32x1xf32>
    %134 = vector.shape_cast %133 : vector<1x32x1xf32> to vector<32x1xf32>
    %c2_85 = arith.constant 2 : index
    %c0_86 = arith.constant 0 : index
    %c0_87 = arith.constant 0 : index
    %135 = vector.load %arg10[%c2_85, %c0_86, %c0_87] : memref<4x32x32xbf16, #tpu.memory_space<vmem>>, vector<1x32x32xbf16>
    %136 = vector.shape_cast %135 : vector<1x32x32xbf16> to vector<32x32xbf16>
    %c2_88 = arith.constant 2 : index
    %c0_89 = arith.constant 0 : index
    %c0_90 = arith.constant 0 : index
    %137 = vector.load %arg11[%c2_88, %c0_89, %c0_90] : memref<4x32x1xf32, #tpu.memory_space<vmem>>, vector<1x32x1xf32>
    %138 = vector.shape_cast %137 : vector<1x32x1xf32> to vector<32x1xf32>
    %cst_91 = arith.constant 0.000000e+00 : bf16
    %139 = vector.broadcast %cst_91 : bf16 to vector<32x40xbf16>
    %140 = tpu.concatenate %139, %122 in 1 : vector<32x40xbf16>, vector<32x128xbf16> -> vector<32x168xbf16>
    %141 = vector.extract_strided_slice %140 {offsets = [0, 0], sizes = [32, 128], strides = [1, 1]} : vector<32x168xbf16> to vector<32x128xbf16>
    %142 = vector.extract_strided_slice %140 {offsets = [0, 8], sizes = [32, 128], strides = [1, 1]} : vector<32x168xbf16> to vector<32x128xbf16>
    %143 = vector.extract_strided_slice %140 {offsets = [0, 16], sizes = [32, 128], strides = [1, 1]} : vector<32x168xbf16> to vector<32x128xbf16>
    %144 = vector.extract_strided_slice %140 {offsets = [0, 24], sizes = [32, 128], strides = [1, 1]} : vector<32x168xbf16> to vector<32x128xbf16>
    %145 = vector.extract_strided_slice %140 {offsets = [0, 32], sizes = [32, 128], strides = [1, 1]} : vector<32x168xbf16> to vector<32x128xbf16>
    %146 = vector.extract_strided_slice %140 {offsets = [0, 40], sizes = [32, 128], strides = [1, 1]} : vector<32x168xbf16> to vector<32x128xbf16>
    %147 = tpu.concatenate %141, %142, %143, %144, %145, %146 in 0 : vector<32x128xbf16>, vector<32x128xbf16>, vector<32x128xbf16>, vector<32x128xbf16>, vector<32x128xbf16>, vector<32x128xbf16> -> vector<192x128xbf16>
    %cst_92 = arith.constant dense<0.000000e+00> : vector<32x128xf32>
    %148 = tpu.matmul %124, %147, %cst_92 {dimension_numbers = #tpu.dot_dimension_numbers<[1], [0], [0], [1], [0, 0, 1, 1], [], []>} : vector<32x192xbf16>, vector<192x128xbf16>, vector<32x128xf32> -> vector<32x128xf32>
    %149 = vector.broadcast %126 : vector<32x1xf32> to vector<32x128xf32>
    %150 = arith.mulf %148, %149 : vector<32x128xf32>
    %151 = vector.broadcast %128 : vector<32x1xf32> to vector<32x128xf32>
    %152 = arith.addf %150, %151 : vector<32x128xf32>
    %cst_93 = arith.constant 0.000000e+00 : f32
    %153 = vector.broadcast %cst_93 : f32 to vector<32x128xf32>
    %154 = arith.maximumf %152, %153 : vector<32x128xf32>
    %155 = arith.truncf %154 : vector<32x128xf32> to vector<32x128xbf16>
    %cst_94 = arith.constant 0.000000e+00 : bf16
    %156 = vector.broadcast %cst_94 : bf16 to vector<32x40xbf16>
    %157 = tpu.concatenate %156, %155 in 1 : vector<32x40xbf16>, vector<32x128xbf16> -> vector<32x168xbf16>
    %158 = vector.extract_strided_slice %157 {offsets = [0, 0], sizes = [32, 128], strides = [1, 1]} : vector<32x168xbf16> to vector<32x128xbf16>
    %159 = vector.extract_strided_slice %157 {offsets = [0, 8], sizes = [32, 128], strides = [1, 1]} : vector<32x168xbf16> to vector<32x128xbf16>
    %160 = vector.extract_strided_slice %157 {offsets = [0, 16], sizes = [32, 128], strides = [1, 1]} : vector<32x168xbf16> to vector<32x128xbf16>
    %161 = vector.extract_strided_slice %157 {offsets = [0, 24], sizes = [32, 128], strides = [1, 1]} : vector<32x168xbf16> to vector<32x128xbf16>
    %162 = vector.extract_strided_slice %157 {offsets = [0, 32], sizes = [32, 128], strides = [1, 1]} : vector<32x168xbf16> to vector<32x128xbf16>
    %163 = vector.extract_strided_slice %157 {offsets = [0, 40], sizes = [32, 128], strides = [1, 1]} : vector<32x168xbf16> to vector<32x128xbf16>
    %164 = tpu.concatenate %158, %159, %160, %161, %162, %163 in 0 : vector<32x128xbf16>, vector<32x128xbf16>, vector<32x128xbf16>, vector<32x128xbf16>, vector<32x128xbf16>, vector<32x128xbf16> -> vector<192x128xbf16>
    %cst_95 = arith.constant dense<0.000000e+00> : vector<32x128xf32>
    %165 = tpu.matmul %130, %164, %cst_95 {dimension_numbers = #tpu.dot_dimension_numbers<[1], [0], [0], [1], [0, 0, 1, 1], [], []>} : vector<32x192xbf16>, vector<192x128xbf16>, vector<32x128xf32> -> vector<32x128xf32>
    %166 = vector.broadcast %132 : vector<32x1xf32> to vector<32x128xf32>
    %167 = arith.mulf %165, %166 : vector<32x128xf32>
    %168 = vector.broadcast %134 : vector<32x1xf32> to vector<32x128xf32>
    %169 = arith.addf %167, %168 : vector<32x128xf32>
    %cst_96 = arith.constant 0.000000e+00 : f32
    %170 = vector.broadcast %cst_96 : f32 to vector<32x128xf32>
    %171 = arith.maximumf %169, %170 : vector<32x128xf32>
    %172 = arith.truncf %171 : vector<32x128xf32> to vector<32x128xbf16>
    %cst_97 = arith.constant dense<0.000000e+00> : vector<32x128xf32>
    %173 = tpu.matmul %136, %172, %cst_97 {dimension_numbers = #tpu.dot_dimension_numbers<[1], [0], [0], [1], [0, 0, 1, 1], [], []>} : vector<32x32xbf16>, vector<32x128xbf16>, vector<32x128xf32> -> vector<32x128xf32>
    %174 = arith.addf %171, %173 : vector<32x128xf32>
    %175 = vector.broadcast %138 : vector<32x1xf32> to vector<32x128xf32>
    %176 = arith.addf %174, %175 : vector<32x128xf32>
    %177 = vector.extract_strided_slice %171 {offsets = [0, 127], sizes = [32, 1], strides = [1, 1]} : vector<32x128xf32> to vector<32x1xf32>
    %178 = arith.addf %121, %177 : vector<32x1xf32>
    %179 = arith.truncf %176 : vector<32x128xf32> to vector<32x128xbf16>
    %c3 = arith.constant 3 : index
    %c0_98 = arith.constant 0 : index
    %c0_99 = arith.constant 0 : index
    %180 = vector.load %arg4[%c3, %c0_98, %c0_99] : memref<4x32x192xbf16, #tpu.memory_space<vmem>>, vector<1x32x192xbf16>
    %181 = vector.shape_cast %180 : vector<1x32x192xbf16> to vector<32x192xbf16>
    %c3_100 = arith.constant 3 : index
    %c0_101 = arith.constant 0 : index
    %c0_102 = arith.constant 0 : index
    %182 = vector.load %arg5[%c3_100, %c0_101, %c0_102] : memref<4x32x1xf32, #tpu.memory_space<vmem>>, vector<1x32x1xf32>
    %183 = vector.shape_cast %182 : vector<1x32x1xf32> to vector<32x1xf32>
    %c3_103 = arith.constant 3 : index
    %c0_104 = arith.constant 0 : index
    %c0_105 = arith.constant 0 : index
    %184 = vector.load %arg6[%c3_103, %c0_104, %c0_105] : memref<4x32x1xf32, #tpu.memory_space<vmem>>, vector<1x32x1xf32>
    %185 = vector.shape_cast %184 : vector<1x32x1xf32> to vector<32x1xf32>
    %c3_106 = arith.constant 3 : index
    %c0_107 = arith.constant 0 : index
    %c0_108 = arith.constant 0 : index
    %186 = vector.load %arg7[%c3_106, %c0_107, %c0_108] : memref<4x32x192xbf16, #tpu.memory_space<vmem>>, vector<1x32x192xbf16>
    %187 = vector.shape_cast %186 : vector<1x32x192xbf16> to vector<32x192xbf16>
    %c3_109 = arith.constant 3 : index
    %c0_110 = arith.constant 0 : index
    %c0_111 = arith.constant 0 : index
    %188 = vector.load %arg8[%c3_109, %c0_110, %c0_111] : memref<4x32x1xf32, #tpu.memory_space<vmem>>, vector<1x32x1xf32>
    %189 = vector.shape_cast %188 : vector<1x32x1xf32> to vector<32x1xf32>
    %c3_112 = arith.constant 3 : index
    %c0_113 = arith.constant 0 : index
    %c0_114 = arith.constant 0 : index
    %190 = vector.load %arg9[%c3_112, %c0_113, %c0_114] : memref<4x32x1xf32, #tpu.memory_space<vmem>>, vector<1x32x1xf32>
    %191 = vector.shape_cast %190 : vector<1x32x1xf32> to vector<32x1xf32>
    %cst_115 = arith.constant 0.000000e+00 : bf16
    %192 = vector.broadcast %cst_115 : bf16 to vector<32x160xbf16>
    %193 = tpu.concatenate %192, %179 in 1 : vector<32x160xbf16>, vector<32x128xbf16> -> vector<32x288xbf16>
    %194 = vector.extract_strided_slice %193 {offsets = [0, 0], sizes = [32, 128], strides = [1, 1]} : vector<32x288xbf16> to vector<32x128xbf16>
    %195 = vector.extract_strided_slice %193 {offsets = [0, 32], sizes = [32, 128], strides = [1, 1]} : vector<32x288xbf16> to vector<32x128xbf16>
    %196 = vector.extract_strided_slice %193 {offsets = [0, 64], sizes = [32, 128], strides = [1, 1]} : vector<32x288xbf16> to vector<32x128xbf16>
    %197 = vector.extract_strided_slice %193 {offsets = [0, 96], sizes = [32, 128], strides = [1, 1]} : vector<32x288xbf16> to vector<32x128xbf16>
    %198 = vector.extract_strided_slice %193 {offsets = [0, 128], sizes = [32, 128], strides = [1, 1]} : vector<32x288xbf16> to vector<32x128xbf16>
    %199 = vector.extract_strided_slice %193 {offsets = [0, 160], sizes = [32, 128], strides = [1, 1]} : vector<32x288xbf16> to vector<32x128xbf16>
    %200 = tpu.concatenate %194, %195, %196, %197, %198, %199 in 0 : vector<32x128xbf16>, vector<32x128xbf16>, vector<32x128xbf16>, vector<32x128xbf16>, vector<32x128xbf16>, vector<32x128xbf16> -> vector<192x128xbf16>
    %cst_116 = arith.constant dense<0.000000e+00> : vector<32x128xf32>
    %201 = tpu.matmul %181, %200, %cst_116 {dimension_numbers = #tpu.dot_dimension_numbers<[1], [0], [0], [1], [0, 0, 1, 1], [], []>} : vector<32x192xbf16>, vector<192x128xbf16>, vector<32x128xf32> -> vector<32x128xf32>
    %202 = vector.broadcast %183 : vector<32x1xf32> to vector<32x128xf32>
    %203 = arith.mulf %201, %202 : vector<32x128xf32>
    %204 = vector.broadcast %185 : vector<32x1xf32> to vector<32x128xf32>
    %205 = arith.addf %203, %204 : vector<32x128xf32>
    %cst_117 = arith.constant 0.000000e+00 : f32
    %206 = vector.broadcast %cst_117 : f32 to vector<32x128xf32>
    %207 = arith.maximumf %205, %206 : vector<32x128xf32>
    %208 = arith.truncf %207 : vector<32x128xf32> to vector<32x128xbf16>
    %cst_118 = arith.constant 0.000000e+00 : bf16
    %209 = vector.broadcast %cst_118 : bf16 to vector<32x160xbf16>
    %210 = tpu.concatenate %209, %208 in 1 : vector<32x160xbf16>, vector<32x128xbf16> -> vector<32x288xbf16>
    %211 = vector.extract_strided_slice %210 {offsets = [0, 0], sizes = [32, 128], strides = [1, 1]} : vector<32x288xbf16> to vector<32x128xbf16>
    %212 = vector.extract_strided_slice %210 {offsets = [0, 32], sizes = [32, 128], strides = [1, 1]} : vector<32x288xbf16> to vector<32x128xbf16>
    %213 = vector.extract_strided_slice %210 {offsets = [0, 64], sizes = [32, 128], strides = [1, 1]} : vector<32x288xbf16> to vector<32x128xbf16>
    %214 = vector.extract_strided_slice %210 {offsets = [0, 96], sizes = [32, 128], strides = [1, 1]} : vector<32x288xbf16> to vector<32x128xbf16>
    %215 = vector.extract_strided_slice %210 {offsets = [0, 128], sizes = [32, 128], strides = [1, 1]} : vector<32x288xbf16> to vector<32x128xbf16>
    %216 = vector.extract_strided_slice %210 {offsets = [0, 160], sizes = [32, 128], strides = [1, 1]} : vector<32x288xbf16> to vector<32x128xbf16>
    %217 = tpu.concatenate %211, %212, %213, %214, %215, %216 in 0 : vector<32x128xbf16>, vector<32x128xbf16>, vector<32x128xbf16>, vector<32x128xbf16>, vector<32x128xbf16>, vector<32x128xbf16> -> vector<192x128xbf16>
    %cst_119 = arith.constant dense<0.000000e+00> : vector<32x128xf32>
    %218 = tpu.matmul %187, %217, %cst_119 {dimension_numbers = #tpu.dot_dimension_numbers<[1], [0], [0], [1], [0, 0, 1, 1], [], []>} : vector<32x192xbf16>, vector<192x128xbf16>, vector<32x128xf32> -> vector<32x128xf32>
    %219 = vector.broadcast %189 : vector<32x1xf32> to vector<32x128xf32>
    %220 = arith.mulf %218, %219 : vector<32x128xf32>
    %221 = vector.broadcast %191 : vector<32x1xf32> to vector<32x128xf32>
    %222 = arith.addf %220, %221 : vector<32x128xf32>
    %cst_120 = arith.constant 0.000000e+00 : f32
    %223 = vector.broadcast %cst_120 : f32 to vector<32x128xf32>
    %224 = arith.maximumf %222, %223 : vector<32x128xf32>
    %225 = vector.extract_strided_slice %224 {offsets = [0, 127], sizes = [32, 1], strides = [1, 1]} : vector<32x128xf32> to vector<32x1xf32>
    %226 = arith.addf %178, %225 : vector<32x1xf32>
    %c0_121 = arith.constant 0 : index
    %c0_122 = arith.constant 0 : index
    %c0_123 = arith.constant 0 : index
    %227 = vector.load %arg12[%c0_121, %c0_122, %c0_123] : memref<1x32x1xf32, #tpu.memory_space<vmem>>, vector<1x32x1xf32>
    %228 = vector.shape_cast %227 : vector<1x32x1xf32> to vector<32x1xf32>
    %229 = vector.shape_cast %226 : vector<32x1xf32> to vector<1x32x1xf32>
    tpu.vector_store %arg12[%c0_121, %c0_122, %c0_123], %229 {strides = array<i32>} : memref<1x32x1xf32, #tpu.memory_space<vmem>>, vector<1x32x1xf32>,
    return
  }
  func.func @transform_0(%arg0: i32) -> (i32, i32, i32) {
    %c0_i32 = arith.constant 0 : i32
    %c0_i32_0 = arith.constant 0 : i32
    %c0_i32_1 = arith.constant 0 : i32
    return %arg0, %c0_i32, %c0_i32_0 : i32, i32, i32
  }
  func.func @transform_1(%arg0: i32) -> (i32, i32) {
    %c0_i32 = arith.constant 0 : i32
    %c0_i32_0 = arith.constant 0 : i32
    %c0_i32_1 = arith.constant 0 : i32
    return %c0_i32, %c0_i32_0 : i32, i32
  }
  func.func @transform_2(%arg0: i32) -> (i32, i32) {
    %c0_i32 = arith.constant 0 : i32
    %c0_i32_0 = arith.constant 0 : i32
    %c0_i32_1 = arith.constant 0 : i32
    return %c0_i32, %c0_i32_0 : i32, i32
  }
  func.func @transform_3(%arg0: i32) -> (i32, i32, i32) {
    %c0_i32 = arith.constant 0 : i32
    %c0_i32_0 = arith.constant 0 : i32
    %c0_i32_1 = arith.constant 0 : i32
    %c0_i32_2 = arith.constant 0 : i32
    return %c0_i32, %c0_i32_0, %c0_i32_1 : i32, i32, i32
  }
  func.func @transform_4(%arg0: i32) -> (i32, i32, i32) {
    %c0_i32 = arith.constant 0 : i32
    %c0_i32_0 = arith.constant 0 : i32
    %c0_i32_1 = arith.constant 0 : i32
    %c0_i32_2 = arith.constant 0 : i32
    return %c0_i32, %c0_i32_0, %c0_i32_1 : i32, i32, i32
  }
  func.func @transform_5(%arg0: i32) -> (i32, i32, i32) {
    %c0_i32 = arith.constant 0 : i32
    %c0_i32_0 = arith.constant 0 : i32
    %c0_i32_1 = arith.constant 0 : i32
    %c0_i32_2 = arith.constant 0 : i32
    return %c0_i32, %c0_i32_0, %c0_i32_1 : i32, i32, i32
  }
  func.func @transform_6(%arg0: i32) -> (i32, i32, i32) {
    %c0_i32 = arith.constant 0 : i32
    %c0_i32_0 = arith.constant 0 : i32
    %c0_i32_1 = arith.constant 0 : i32
    %c0_i32_2 = arith.constant 0 : i32
    return %c0_i32, %c0_i32_0, %c0_i32_1 : i32, i32, i32
  }
  func.func @transform_7(%arg0: i32) -> (i32, i32, i32) {
    %c0_i32 = arith.constant 0 : i32
    %c0_i32_0 = arith.constant 0 : i32
    %c0_i32_1 = arith.constant 0 : i32
    %c0_i32_2 = arith.constant 0 : i32
    return %c0_i32, %c0_i32_0, %c0_i32_1 : i32, i32, i32
  }
  func.func @transform_8(%arg0: i32) -> (i32, i32, i32) {
    %c0_i32 = arith.constant 0 : i32
    %c0_i32_0 = arith.constant 0 : i32
    %c0_i32_1 = arith.constant 0 : i32
    %c0_i32_2 = arith.constant 0 : i32
    return %c0_i32, %c0_i32_0, %c0_i32_1 : i32, i32, i32
  }
  func.func @transform_9(%arg0: i32) -> (i32, i32, i32) {
    %c0_i32 = arith.constant 0 : i32
    %c0_i32_0 = arith.constant 0 : i32
    %c0_i32_1 = arith.constant 0 : i32
    %c0_i32_2 = arith.constant 0 : i32
    return %c0_i32, %c0_i32_0, %c0_i32_1 : i32, i32, i32
  }
  func.func @transform_10(%arg0: i32) -> (i32, i32, i32) {
    %c0_i32 = arith.constant 0 : i32
    %c0_i32_0 = arith.constant 0 : i32
    %c0_i32_1 = arith.constant 0 : i32
    %c0_i32_2 = arith.constant 0 : i32
    return %c0_i32, %c0_i32_0, %c0_i32_1 : i32, i32, i32
  }
  func.func @transform_11(%arg0: i32) -> (i32, i32, i32) {
    %c0_i32 = arith.constant 0 : i32
    %c0_i32_0 = arith.constant 0 : i32
    %c0_i32_1 = arith.constant 0 : i32
    return %arg0, %c0_i32, %c0_i32_0 : i32, i32, i32
  }
}

</mosaic_0001>

<bundles_post_ra>
// kernel: distpt_forward.1
= control target key start
LH: loop header
LB: loop body
LE: loop exit
PB: predicated region body
PF: predicated region fallthrough
CT: control target
= control target key end

     0   :  { %s3004_s17 = smov 0   ;;  %s3896_s0 = inlined_call_operand.vmem [shape: bf16[4,16,128], index: 0, kind: input, shape index: {}]   ;;  %s3897_s1 = inlined_call_operand.vmem [shape: bf16[32,16], index: 1, kind: input, shape index: {}]   ;;  %s3898_s2 = inlined_call_operand.vmem [shape: f32[32,1], index: 2, kind: input, shape index: {}]   ;;  %s3899_s3 = inlined_call_operand.vmem [shape: bf16[4,32,192], index: 3, kind: input, shape index: {}]   ;;  %s3900_s4 = inlined_call_operand.vmem [shape: f32[4,32,1], index: 4, kind: input, shape index: {}]   ;;  %s3901_s5 = inlined_call_operand.vmem [shape: f32[4,32,1], index: 5, kind: input, shape index: {}]   ;;  %s3902_s6 = inlined_call_operand.vmem [shape: bf16[4,32,192], index: 6, kind: input, shape index: {}]   ;;  %s3903_s7 = inlined_call_operand.vmem [shape: f32[4,32,1], index: 7, kind: input, shape index: {}]   ;;  %s3904_s8 = inlined_call_operand.vmem [shape: f32[4,32,1], index: 8, kind: input, shape index: {}]   ;;  %s3905_s9 = inlined_call_operand.vmem [shape: bf16[4,32,32], index: 9, kind: input, shape index: {}]   ;;  %s3906_s10 = inlined_call_operand.vmem [shape: f32[4,32,1], index: 10, kind: input, shape index: {}]   ;;  %s3907_s11 = inlined_call_operand.vmem [shape: f32[4,32,1], index: 11, kind: output, shape index: {}]  }
   0x1 LB: > { %s2588_s18 = sadd.s32 4294967295, %s2923_s17   ;;  %p2592_p0 = scmp.ge.s32.totalorder %s2923_s17, 1  ;;  %s2923_s17 = sphi %s3004_s17, %s21_s17  }
   0x2   : > { %p337_p1 = scmp.lt.s32.totalorder %s2923_s17, 5 }
   0x4   : > { %p338_p2 = pnand %p2592_p0, %p337_p1 }
   0x5   : > { %p377_p3 = scmp.lt.s32.totalorder (!%p338_p2), %s2588_s18, 3  ;;  %v2861_v0 = vld [vmem:[%s3897_s1] sm:$0xff] (!%p338_p2)   ;;  %vm434_vm0 = vcmask (!%p338_p2), 130048   ;;  %v396_v2 = vld [vmem:[%s3898_s2 + $0x10] sm:$0xff] (!%p338_p2)  ;;  %v2925_v3 = vmov (!%p338_p2), 0   ;;  %v395_v4 = vld [vmem:[%s3898_s2 + $0x8] sm:$0xff] (!%p338_p2) }
   0x6   : > { %341 = sbr.rel (%p338_p2) target bundleno = 5023 (0x139f), region = 64  ;;  %2803 = vmatprep.mubr.msk.bf16.mxu0 (!%p338_p2), %vm434_vm0, %v2861_v0  ;;  %v394_v1 = vld [vmem:[%s3898_s2] sm:$0xff] (!%p338_p2)  ;;  %2858 = vset.pattern.permute.xlu0 (!%p338_p2), %v2925_v3  ;;  %v397_v5 = vld [vmem:[%s3898_s2 + $0x18] sm:$0xff] (!%p338_p2)  ;;  %v2862_v7 = vld [vmem:[%s3897_s1 + $0x8] sm:$0xff] (!%p338_p2)   ;;  %s2926_s16 = smov (!%p338_p2), 5   ;;  %vm530_vm1 = vcmask (!%p338_p2), 39936  }
   0x7   : > { %2859 = vset.pattern.permute.xlu1 (!%p338_p2), %v2925_v3  ;;  %400 = vperm.xlu0 (!%p338_p2), %2858, %v394_v1   ;;  %vm3045_vm2 = vmneg (!%p338_p2), %vm530_vm1  ;;  %s2927_s19 = smov (!%p338_p2), 127   ;;  %s2928_s20 = smov (!%p338_p2), 126   ;;  %v2865_v27 = vld [vmem:[%s3899_s3 + $0x4] ss:$8 sps:$4 sm:$0xff] (!%p338_p2)   ;;  %vm623_vm3 = vcmask (!%p338_p2), 523264   ;;  %v499_v32 = vld [vmem:[%s3900_s4 + $0x18] sm:$0xff] (!%p338_p2) }
   0x8   : > { %410 = vperm.xlu1 (!%p338_p2), %2859, %v396_v2   ;;  %630 = vmatprep.subr.bf16.mxu1 (!%p338_p2), %v2925_v3  ;;  %s2929_s21 = smov (!%p338_p2), 125   ;;  %s2930_s22 = smov (!%p338_p2), 124   ;;  %v497_v28 = vld [vmem:[%s3900_s4 + $0x8] sm:$0xff] (!%p338_p2)  ;;  %v496_v29 = vld [vmem:[%s3900_s4] sm:$0xff] (!%p338_p2)  ;;  %v498_v33 = vld [vmem:[%s3900_s4 + $0x10] sm:$0xff] (!%p338_p2)  ;;  %vm548_vm4 = vcmask (!%p338_p2), 1039360  }
   0x9   : > { %2610 = vmatprep.mubr.msk.bf16.mxu1 (!%p338_p2), %vm623_vm3, %v2865_v27  ;;  %s2931_s25 = smov (!%p338_p2), 123   ;;  %v501_v30 = vld [vmem:[%s3901_s5 + $0x8] sm:$0xff] (!%p338_p2)  ;;  %v500_v31 = vld [vmem:[%s3901_s5] sm:$0xff] (!%p338_p2)  ;;  %v503_v34 = vld [vmem:[%s3901_s5 + $0x18] sm:$0xff] (!%p338_p2)  ;;  %vm561_vm5 = vcmask (!%p338_p2), 1031168   ;;  %vm574_vm6 = vcmask (!%p338_p2), 1022976  }
   0xa   : > { %v502_v35 = vld [vmem:[%s3901_s5 + $0x10] sm:$0xff] (!%p338_p2)  ;;  %vm587_vm7 = vcmask (!%p338_p2), 1014784   ;;  %vm600_vm8 = vcmask (!%p338_p2), 1006592   ;;  %v2863_v2 = vld [vmem:[%s3899_s3] ss:$8 sps:$4 sm:$0xff] (!%p338_p2)   ;;  %vm944_vm9 = vcmask (!%p338_p2), 261120  }
   0xb   : > { %405 = vperm.xlu0 (!%p338_p2), %2858, %v395_v4   ;;  %v2866_v4 = vld [vmem:[%s3899_s3 + $0x14] ss:$8 sps:$4 sm:$0xff] (!%p338_p2)   ;;  %v2869_v22 = vld [vmem:[%s3902_s6 + $0x4] ss:$8 sps:$4 sm:$0xff] (!%p338_p2)   ;;  %s2932_s29 = smov (!%p338_p2), 10   ;;  %vm1080_vm10 = vcmask (!%p338_p2), 80896  }
   0xc   : > { %415 = vperm.xlu1 (!%p338_p2), %2859, %v397_v5   ;;  %v2868_v5 = vld [vmem:[%s3899_s3 + $0x10] ss:$8 sps:$4 sm:$0xff] (!%p338_p2)   ;;  %vm3262_vm11 = vmneg (!%p338_p2), %vm1080_vm10  ;;  %s2933_s30 = smov (!%p338_p2), 122   ;;  %s2934_s12 = smov (!%p338_p2), 120   ;;  %vm1121_vm12 = vcmask (!%p338_p2), 998400   ;;  %vm1134_vm13 = vcmask (!%p338_p2), 982016  }
   0xd   : > { %s3917_s18 = smov (!%p377_p3, %s2588_s18), 3  ;;  %s2935_s14 = smov 118   ;;  %vm1147_vm14 = vcmask 965632   ;;  %vm1625_vm15 = vcmask 326656  }
   0xe   : > { %s2784_s27 = sshll.u32 %s3917_s18, 3  ;;  %s2936_s15 = smov 40  }
   0xf   : > { %s381_s13 = scalar_lea.vmem %s3896_s0, %s2784_s27  ;;  %s2937_s23 = smov 112  }
  0x10   : > { %v2860_v6 = vld [vmem:[%s381_s13] sm:$0xff]   ;;  %s2938_s24 = smov 104   ;;  %s2941_s26 = smov 32  }
  0x11   : > { %2801 = vmatprep.subr.bf16.mxu0 %v2860_v6  ;;  %s2942_s27 = smov 64  }
  0x12   : > { %2802 = vmatpush3.bf16.msra.mxu0 %v2860_v6 }
  0x13   : > { %831 = vmatprep.subr.bf16.mxu0 %v2925_v3 }
  0x15   : > { %2804 = vmatmul.mubr.msk.bf16.vlgmr.msra.gmra.mrb[0].mxu0 %vm434_vm0, %v2862_v7  ;;  %vm3479_vm0 = vmneg %vm1625_vm15 }
  0x16   : > { %2620 = vmatprep.mubr.msk.bf16.mxu0 %vm623_vm3, %v2869_v22 }
  0x86   : > { %v401_v9 = vpop.permute.xlu0 %400 }
  0x87   : > { %v411_v8 = vpop.permute.xlu1 %410 }
  0x8a   : > { %v406_v14 = vpop.permute.xlu0 %405 }
  0x8b   : > { %v416_v11 = vpop.permute.xlu1 %415 }
  0xe8   : > { %v2805_v10 = vpop.f32.mrb[0].mxu0 }
  0xe9   : > { %v475_v12 = vpop.f32.mrb[1].mxu0  ;;  %v484_v15 = vadd.f32 %v2805_v10, %v411_v8 }
  0xea   : > { %v2806_v13 = vpop.f32.mrb[2].mxu0  ;;  %v476_v18 = vadd.f32 %v475_v12, %v401_v9 }
  0xeb   : > { %v487_v16 = vadd.f32 %v2806_v13, %v416_v11  ;;  %v478_v17 = vpop.f32.mrb[3].mxu0 }
  0xec   : > { %v479_v19 = vadd.f32 %v478_v17, %v406_v14 }
  0xed   : > { %v491_v20 = vpack.c.bf16 %v487_v16, %v484_v15 }
  0xee   : > { %v490_v21 = vpack.c.bf16 %v479_v19, %v476_v18 }
  0xef   : > { %528 = vrot.lane.b32.xlu1 %v491_v20, %s2926_s16 }
  0xf0   : > { %526 = vrot.lane.b32.xlu0 %v490_v21, %s2926_s16 }
 0x161   : > { %v529_v25 = vpop.permute.xlu1 %528 }
 0x162   : > { %v527_v23 = vpop.permute.xlu0 %526  ;;  %v536_v26 = vsel %vm530_vm1, 0, %v529_v25 }
 0x163   : > { %2607 = vmatpush1.bf16.msk.msra.mxu1 %vm3045_vm2, %v527_v23  ;;  %542 = vrot.lane.b32.xlu1 %v527_v23, %s2927_s19  ;;  %v533_v24 = vsel %vm530_vm1, 0, %v527_v23 }
 0x164   : > { %540 = vrot.lane.b32.xlu0 %v533_v24, %s2927_s19  ;;  %632 = vmatprep.subr.bf16.mxu1 %v2925_v3 }
 0x167   : > { %2609 = vmatpush1.bf16.msk.msra.mxu1 %vm3045_vm2, %v529_v25  ;;  %546 = vrot.lane.b32.xlu1 %v529_v25, %s2927_s19 }
 0x168   : > { %544 = vrot.lane.b32.xlu0 %v536_v26, %s2927_s19  ;;  %634 = vmatprep.subr.bf16.mxu1 %v2925_v3 }
 0x16b   : > { %555 = vrot.lane.b32.xlu1 %v527_v23, %s2928_s20 }
 0x16c   : > { %553 = vrot.lane.b32.xlu0 %v533_v24, %s2928_s20 }
 0x16f   : > { %559 = vrot.lane.b32.xlu1 %v529_v25, %s2928_s20 }
 0x170   : > { %557 = vrot.lane.b32.xlu0 %v536_v26, %s2928_s20 }
 0x173   : > { %568 = vrot.lane.b32.xlu1 %v527_v23, %s2929_s21 }
 0x174   : > { %566 = vrot.lane.b32.xlu0 %v533_v24, %s2929_s21 }
 0x177   : > { %572 = vrot.lane.b32.xlu1 %v529_v25, %s2929_s21 }
 0x178   : > { %570 = vrot.lane.b32.xlu0 %v536_v26, %s2929_s21 }
 0x17b   : > { %581 = vrot.lane.b32.xlu1 %v527_v23, %s2930_s22 }
 0x17c   : > { %579 = vrot.lane.b32.xlu0 %v533_v24, %s2930_s22 }
 0x17f   : > { %585 = vrot.lane.b32.xlu1 %v529_v25, %s2930_s22 }
 0x180   : > { %583 = vrot.lane.b32.xlu0 %v536_v26, %s2930_s22 }
 0x183   : > { %594 = vrot.lane.b32.xlu1 %v527_v23, %s2931_s25 }
 0x184   : > { %592 = vrot.lane.b32.xlu0 %v533_v24, %s2931_s25 }
 0x187   : > { %598 = vrot.lane.b32.xlu1 %v529_v25, %s2931_s25 }
 0x188   : > { %596 = vrot.lane.b32.xlu0 %v536_v26, %s2931_s25 }
 0x18b   : > { %686 = vperm.xlu1 %2859, %v497_v28  }
 0x18c   : > { %681 = vperm.xlu0 %2858, %v496_v29  }
 0x18f   : > { %710 = vperm.xlu1 %2859, %v501_v30  }
 0x190   : > { %705 = vperm.xlu0 %2858, %v500_v31  }
 0x193   : > { %696 = vperm.xlu1 %2859, %v499_v32  }
 0x194   : > { %691 = vperm.xlu0 %2858, %v498_v33  }
 0x197   : > { %720 = vperm.xlu1 %2859, %v503_v34  }
 0x198   : > { %715 = vperm.xlu0 %2858, %v502_v35  }
 0x1d5   : > { %v543_v36 = vpop.permute.xlu1 %542 }
 0x1d6   : > { %v541_v37 = vpop.permute.xlu0 %540 }
 0x1d7   : > { %v549_v38 = vsel %vm548_vm4, %v541_v37, %v543_v36 }
 0x1d8   : > { %635 = vmatpush1.bf16.msra.mxu1 %v549_v38 }
 0x1d9   : > { %v547_v39 = vpop.permute.xlu1 %546  ;;  %636 = vmatprep.subr.bf16.mxu1 %v2925_v3 }
 0x1da   : > { %v545_v40 = vpop.permute.xlu0 %544 }
 0x1db   : > { %v550_v41 = vsel %vm548_vm4, %v545_v40, %v547_v39 }
 0x1dc   : > { %637 = vmatpush1.bf16.msra.mxu1 %v550_v41  ;;  %v509_v41 = vld [vmem:[%s3903_s7 + $0x8] sm:$0xff] }
 0x1dd   : > { %v556_v42 = vpop.permute.xlu1 %555  ;;  %638 = vmatprep.subr.bf16.mxu1 %v2925_v3 }
 0x1de   : > { %v554_v43 = vpop.permute.xlu0 %553 }
 0x1df   : > { %v562_v44 = vsel %vm561_vm5, %v554_v43, %v556_v42  ;;  %v508_v42 = vld [vmem:[%s3903_s7] sm:$0xff]  ;;  %v513_v43 = vld [vmem:[%s3904_s8 + $0x8] sm:$0xff] }
 0x1e0   : > { %639 = vmatpush1.bf16.msra.mxu1 %v562_v44  ;;  %v512_v44 = vld [vmem:[%s3904_s8] sm:$0xff] }
 0x1e1   : > { %v560_v45 = vpop.permute.xlu1 %559  ;;  %640 = vmatprep.subr.bf16.mxu1 %v2925_v3 }
 0x1e2   : > { %v558_v46 = vpop.permute.xlu0 %557 }
 0x1e3   : > { %v563_v47 = vsel %vm561_vm5, %v558_v46, %v560_v45  ;;  %v511_v45 = vld [vmem:[%s3903_s7 + $0x18] sm:$0xff]  ;;  %v510_v46 = vld [vmem:[%s3903_s7 + $0x10] sm:$0xff] }
 0x1e4   : > { %641 = vmatpush1.bf16.msra.mxu1 %v563_v47  ;;  %v515_v47 = vld [vmem:[%s3904_s8 + $0x18] sm:$0xff] }
 0x1e5   : > { %v569_v48 = vpop.permute.xlu1 %568  ;;  %642 = vmatprep.subr.bf16.mxu1 %v2925_v3 }
 0x1e6   : > { %v567_v49 = vpop.permute.xlu0 %566 }
 0x1e7   : > { %v575_v50 = vsel %vm574_vm6, %v567_v49, %v569_v48  ;;  %v514_v48 = vld [vmem:[%s3904_s8 + $0x10] sm:$0xff]  ;;  %v521_v49 = vld [vmem:[%s3906_s10 + $0x8] sm:$0xff] }
 0x1e8   : > { %643 = vmatpush1.bf16.msra.mxu1 %v575_v50  ;;  %v520_v50 = vld [vmem:[%s3906_s10] sm:$0xff] }
 0x1e9   : > { %v573_v51 = vpop.permute.xlu1 %572  ;;  %644 = vmatprep.subr.bf16.mxu1 %v2925_v3 }
 0x1ea   : > { %v571_v52 = vpop.permute.xlu0 %570 }
 0x1eb   : > { %v576_v53 = vsel %vm574_vm6, %v571_v52, %v573_v51  ;;  %v523_v51 = vld [vmem:[%s3906_s10 + $0x18] sm:$0xff]  ;;  %v522_v52 = vld [vmem:[%s3906_s10 + $0x10] sm:$0xff] }
 0x1ec   : > { %645 = vmatpush1.bf16.msra.mxu1 %v576_v53 }
 0x1ed   : > { %v582_v54 = vpop.permute.xlu1 %581  ;;  %646 = vmatprep.subr.bf16.mxu1 %v2925_v3 }
 0x1ee   : > { %v580_v55 = vpop.permute.xlu0 %579 }
 0x1ef   : > { %v588_v56 = vsel %vm587_vm7, %v580_v55, %v582_v54 }
 0x1f0   : > { %647 = vmatpush1.bf16.msra.mxu1 %v588_v56 }
 0x1f1   : > { %v586_v57 = vpop.permute.xlu1 %585  ;;  %648 = vmatprep.subr.bf16.mxu1 %v2925_v3 }
 0x1f2   : > { %v584_v58 = vpop.permute.xlu0 %583 }
 0x1f3   : > { %v589_v59 = vsel %vm587_vm7, %v584_v58, %v586_v57 }
 0x1f4   : > { %649 = vmatpush1.bf16.msra.mxu1 %v589_v59 }
 0x1f5   : > { %v595_v60 = vpop.permute.xlu1 %594  ;;  %650 = vmatprep.subr.bf16.mxu1 %v2925_v3 }
 0x1f6   : > { %v593_v61 = vpop.permute.xlu0 %592 }
 0x1f7   : > { %v601_v62 = vsel %vm600_vm8, %v593_v61, %v595_v60 }
 0x1f8   : > { %651 = vmatpush1.bf16.msra.mxu1 %v601_v62 }
 0x1f9   : > { %v599_v63 = vpop.permute.xlu1 %598  ;;  %652 = vmatprep.subr.bf16.mxu1 %v2925_v3 }
 0x1fa   : > { %v597_v0 = vpop.permute.xlu0 %596 }
 0x1fb   : > { %v602_v1 = vsel %vm600_vm8, %v597_v0, %v599_v63 }
 0x1fc   : > { %653 = vmatpush1.bf16.msra.mxu1 %v602_v1 }
 0x1ff   : > { %663 = vmatmul.mubr.bf16.vlgmr.msra.gmra.mrb[0].mxu1 %v2863_v2 }
 0x200   : > { %2611 = vmatprep.mubr.msk.bf16.mxu1 %vm623_vm3, %v2866_v4 }
 0x207   : > { %671 = vmatmul.mubr.bf16.gmra.mrb[4].mxu1 %v2868_v5 }
 0x20a   : > { %v687_v7 = vpop.permute.xlu1 %686 }
 0x20b   : > { %v682_v6 = vpop.permute.xlu0 %681 }
 0x20e   : > { %v711_v9 = vpop.permute.xlu1 %710 }
 0x20f   : > { %v706_v8 = vpop.permute.xlu0 %705 }
 0x212   : > { %v697_v19 = vpop.permute.xlu1 %696 }
 0x213   : > { %v692_v17 = vpop.permute.xlu0 %691 }
 0x216   : > { %v721_v32 = vpop.permute.xlu1 %720 }
 0x217   : > { %v716_v27 = vpop.permute.xlu0 %715 }
 0x2d2   : > { %v664_v10 = vpop.f32.mrb[0].mxu1 }
 0x2d3   : > { %v699_v11 = vmul.f32 %v682_v6, %v664_v10  ;;  %v666_v12 = vpop.f32.mrb[1].mxu1 }
 0x2d4   : > { %v667_v13 = vpop.f32.mrb[2].mxu1 }
 0x2d5   : > { %v723_v14 = vadd.f32 %v706_v8, %v699_v11  ;;  %v700_v15 = vmul.f32 %v687_v7, %v667_v13  ;;  %v669_v16 = vpop.f32.mrb[3].mxu1 }
 0x2d7   : > { %v724_v18 = vadd.f32 %v711_v9, %v700_v15  ;;  %v727_v20 = vmax.f32 %v723_v14, 0.0 }
 0x2d9   : > { %v728_v21 = vmax.f32 %v724_v18, 0.0 }
 0x2da   : > { %v672_v23 = vpop.f32.mrb[4].mxu1 }
 0x2db   : > { %v701_v24 = vmul.f32 %v692_v17, %v672_v23  ;;  %v674_v25 = vpop.f32.mrb[5].mxu1  ;;  %v731_v26 = vpack.c.bf16 %v728_v21, %v727_v20  ;;  %v2871_v20 = vld [vmem:[%s3902_s6] ss:$8 sps:$4 sm:$0xff]   ;;  %v2872_v21 = vld [vmem:[%s3902_s6 + $0x14] ss:$8 sps:$4 sm:$0xff]  }
 0x2dc   : > { %v675_v28 = vpop.f32.mrb[6].mxu1  ;;  %v2874_v23 = vld [vmem:[%s3902_s6 + $0x10] ss:$8 sps:$4 sm:$0xff]  }
 0x2dd   : > { %v725_v29 = vadd.f32 %v716_v27, %v701_v24  ;;  %v702_v30 = vmul.f32 %v697_v19, %v675_v28  ;;  %v677_v31 = vpop.f32.mrb[7].mxu1  ;;  %735 = vrot.lane.b32.xlu0 %v731_v26, %s2926_s16  ;;  %v2875_v24 = vld [vmem:[%s3905_s9] sm:$0xff]  }
 0x2de   : > { %2811 = vmatprep.mubr.msk.bf16.mxu1 %vm944_vm9, %v2875_v24  ;;  %v2636_v24 = vld [vmem:[%s3901_s5 + $0x30] sm:$0xff] }
 0x2df   : > { %v726_v33 = vadd.f32 %v721_v32, %v702_v30  ;;  %v729_v34 = vmax.f32 %v725_v29, 0.0 }
 0x2e1   : > { %v730_v35 = vmax.f32 %v726_v33, 0.0 }
 0x2e3   : > { %v732_v36 = vpack.c.bf16 %v730_v35, %v729_v34 }
 0x2e5   : > { %737 = vrot.lane.b32.xlu1 %v732_v36, %s2926_s16  ;;  %s2939_s16 = smov 96  }
 0x34f   : > { %v736_v37 = vpop.permute.xlu0 %735 }
 0x350   : > { %2617 = vmatpush1.bf16.msk.msra.mxu0 %vm3045_vm2, %v736_v37  ;;  %749 = vrot.lane.b32.xlu1 %v736_v37, %s2927_s19  ;;  %v740_v38 = vsel %vm530_vm1, 0, %v736_v37 }
 0x351   : > { %747 = vrot.lane.b32.xlu0 %v740_v38, %s2927_s19  ;;  %833 = vmatprep.subr.bf16.mxu0 %v2925_v3 }
 0x357   : > { %v738_v39 = vpop.permute.xlu1 %737 }
 0x358   : > { %2619 = vmatpush1.bf16.msk.msra.mxu0 %vm3045_vm2, %v738_v39  ;;  %753 = vrot.lane.b32.xlu1 %v738_v39, %s2927_s19  ;;  %v743_v40 = vsel %vm530_vm1, 0, %v738_v39  ;;  %vm1654_vm1 = vcmask 916480   ;;  %vm1667_vm2 = vcmask 850944  }
 0x359   : > { %751 = vrot.lane.b32.xlu0 %v743_v40, %s2927_s19  ;;  %835 = vmatprep.subr.bf16.mxu0 %v2925_v3 }
 0x35c   : > { %761 = vrot.lane.b32.xlu1 %v736_v37, %s2928_s20 }
 0x35d   : > { %759 = vrot.lane.b32.xlu0 %v740_v38, %s2928_s20 }
 0x360   : > { %765 = vrot.lane.b32.xlu1 %v738_v39, %s2928_s20 }
 0x361   : > { %763 = vrot.lane.b32.xlu0 %v743_v40, %s2928_s20 }
 0x364   : > { %773 = vrot.lane.b32.xlu1 %v736_v37, %s2929_s21 }
 0x365   : > { %771 = vrot.lane.b32.xlu0 %v740_v38, %s2929_s21 }
 0x368   : > { %777 = vrot.lane.b32.xlu1 %v738_v39, %s2929_s21 }
 0x369   : > { %775 = vrot.lane.b32.xlu0 %v743_v40, %s2929_s21 }
 0x36c   : > { %785 = vrot.lane.b32.xlu1 %v736_v37, %s2930_s22 }
 0x36d   : > { %783 = vrot.lane.b32.xlu0 %v740_v38, %s2930_s22 }
 0x370   : > { %789 = vrot.lane.b32.xlu1 %v738_v39, %s2930_s22 }
 0x371   : > { %787 = vrot.lane.b32.xlu0 %v743_v40, %s2930_s22 }
 0x374   : > { %797 = vrot.lane.b32.xlu1 %v736_v37, %s2931_s25 }
 0x375   : > { %795 = vrot.lane.b32.xlu0 %v740_v38, %s2931_s25 }
 0x378   : > { %801 = vrot.lane.b32.xlu1 %v738_v39, %s2931_s25 }
 0x379   : > { %799 = vrot.lane.b32.xlu0 %v743_v40, %s2931_s25  ;;  %s2943_s25 = smov 1  }
 0x37c   : > { %887 = vperm.xlu1 %2859, %v509_v41  }
 0x37d   : > { %882 = vperm.xlu0 %2858, %v508_v42  }
 0x380   : > { %911 = vperm.xlu1 %2859, %v513_v43  }
 0x381   : > { %906 = vperm.xlu0 %2858, %v512_v44  }
 0x384   : > { %897 = vperm.xlu1 %2859, %v511_v45  }
 0x385   : > { %892 = vperm.xlu0 %2858, %v510_v46  }
 0x388   : > { %921 = vperm.xlu1 %2859, %v515_v47  }
 0x389   : > { %916 = vperm.xlu0 %2858, %v514_v48  }
 0x38c   : > { %1011 = vperm.xlu1 %2859, %v521_v49  }
 0x38d   : > { %1006 = vperm.xlu0 %2858, %v520_v50  }
 0x390   : > { %1021 = vperm.xlu1 %2859, %v523_v51  }
 0x391   : > { %1016 = vperm.xlu0 %2858, %v522_v52  }
 0x3c2   : > { %v750_v53 = vpop.permute.xlu1 %749 }
 0x3c3   : > { %v748_v54 = vpop.permute.xlu0 %747 }
 0x3c4   : > { %v755_v55 = vsel %vm548_vm4, %v748_v54, %v750_v53  ;;  %v2876_v54 = vld [vmem:[%s3905_s9 + $0x8] sm:$0xff]  }
 0x3c5   : > { %836 = vmatpush1.bf16.msra.mxu0 %v755_v55 }
 0x3c6   : > { %837 = vmatprep.subr.bf16.mxu0 %v2925_v3 }
 0x3ca   : > { %v754_v56 = vpop.permute.xlu1 %753 }
 0x3cb   : > { %v752_v57 = vpop.permute.xlu0 %751 }
 0x3cc   : > { %v756_v58 = vsel %vm548_vm4, %v752_v57, %v754_v56  ;;  %vm1680_vm4 = vcmask 785408  }
 0x3cd   : > { %838 = vmatpush1.bf16.msra.mxu0 %v756_v58 }
 0x3ce   : > { %v762_v59 = vpop.permute.xlu1 %761  ;;  %839 = vmatprep.subr.bf16.mxu0 %v2925_v3 }
 0x3cf   : > { %v760_v60 = vpop.permute.xlu0 %759 }
 0x3d0   : > { %v767_v61 = vsel %vm561_vm5, %v760_v60, %v762_v59 }
 0x3d1   : > { %840 = vmatpush1.bf16.msra.mxu0 %v767_v61 }
 0x3d2   : > { %v766_v62 = vpop.permute.xlu1 %765  ;;  %841 = vmatprep.subr.bf16.mxu0 %v2925_v3 }
 0x3d3   : > { %v764_v63 = vpop.permute.xlu0 %763 }
 0x3d4   : > { %v768_v0 = vsel %vm561_vm5, %v764_v63, %v766_v62 }
 0x3d5   : > { %842 = vmatpush1.bf16.msra.mxu0 %v768_v0 }
 0x3d6   : > { %v774_v1 = vpop.permute.xlu1 %773  ;;  %843 = vmatprep.subr.bf16.mxu0 %v2925_v3 }
 0x3d7   : > { %v772_v2 = vpop.permute.xlu0 %771 }
 0x3d8   : > { %v779_v4 = vsel %vm574_vm6, %v772_v2, %v774_v1 }
 0x3d9   : > { %844 = vmatpush1.bf16.msra.mxu0 %v779_v4 }
 0x3da   : > { %v778_v5 = vpop.permute.xlu1 %777  ;;  %845 = vmatprep.subr.bf16.mxu0 %v2925_v3 }
 0x3db   : > { %v776_v6 = vpop.permute.xlu0 %775 }
 0x3dc   : > { %v780_v7 = vsel %vm574_vm6, %v776_v6, %v778_v5  ;;  %vm3776_vm6 = vmneg %vm944_vm9 }
 0x3dd   : > { %846 = vmatpush1.bf16.msra.mxu0 %v780_v7 }
 0x3de   : > { %v786_v8 = vpop.permute.xlu1 %785  ;;  %847 = vmatprep.subr.bf16.mxu0 %v2925_v3 }
 0x3df   : > { %v784_v9 = vpop.permute.xlu0 %783 }
 0x3e0   : > { %v791_v10 = vsel %vm587_vm7, %v784_v9, %v786_v8 }
 0x3e1   : > { %848 = vmatpush1.bf16.msra.mxu0 %v791_v10  ;;  %v2883_v10 = vld [vmem:[%s3902_s6 + $0x24] ss:$8 sps:$4 sm:$0xff]  }
 0x3e2   : > { %v790_v11 = vpop.permute.xlu1 %789  ;;  %849 = vmatprep.subr.bf16.mxu0 %v2925_v3 }
 0x3e3   : > { %v788_v12 = vpop.permute.xlu0 %787 }
 0x3e4   : > { %v792_v13 = vsel %vm587_vm7, %v788_v12, %v790_v11 }
 0x3e5   : > { %850 = vmatpush1.bf16.msra.mxu0 %v792_v13 }
 0x3e6   : > { %v798_v14 = vpop.permute.xlu1 %797  ;;  %851 = vmatprep.subr.bf16.mxu0 %v2925_v3 }
 0x3e7   : > { %v796_v15 = vpop.permute.xlu0 %795 }
 0x3e8   : > { %v803_v16 = vsel %vm600_vm8, %v796_v15, %v798_v14  ;;  %v2879_v15 = vld [vmem:[%s3899_s3 + $0x24] ss:$8 sps:$4 sm:$0xff]  }
 0x3e9   : > { %852 = vmatpush1.bf16.msra.mxu0 %v803_v16  ;;  %v2631_v16 = vld [vmem:[%s3900_s4 + $0x28] sm:$0xff] }
 0x3ea   : > { %v802_v17 = vpop.permute.xlu1 %801  ;;  %853 = vmatprep.subr.bf16.mxu0 %v2925_v3 }
 0x3eb   : > { %v800_v18 = vpop.permute.xlu0 %799 }
 0x3ec   : > { %v804_v19 = vsel %vm600_vm8, %v800_v18, %v802_v17  ;;  %v2630_v17 = vld [vmem:[%s3900_s4 + $0x20] sm:$0xff]  ;;  %v2635_v18 = vld [vmem:[%s3901_s5 + $0x28] sm:$0xff] }
 0x3ed   : > { %854 = vmatpush1.bf16.msra.mxu0 %v804_v19  ;;  %v2634_v19 = vld [vmem:[%s3901_s5 + $0x20] sm:$0xff] }
 0x3ee   : > { %1176 = vmatprep.subr.bf16.mxu0 %v2925_v3 }
 0x3f0   : > { %864 = vmatmul.mubr.bf16.vlgmr.msra.gmra.mrb[4].mxu0 %v2871_v20  ;;  %v2633_v20 = vld [vmem:[%s3900_s4 + $0x38] sm:$0xff] }
 0x3f1   : > { %2621 = vmatprep.mubr.msk.bf16.mxu0 %vm623_vm3, %v2872_v21  ;;  %v2632_v21 = vld [vmem:[%s3900_s4 + $0x30] sm:$0xff] }
 0x3f8   : > { %872 = vmatmul.mubr.bf16.gmra.mrb[8].mxu0 %v2874_v23  ;;  %v2637_v23 = vld [vmem:[%s3901_s5 + $0x38] sm:$0xff] }
 0x3f9   : > { %2666 = vmatprep.mubr.msk.bf16.mxu0 %vm623_vm3, %v2879_v15 }
 0x3fb   : > { %v888_v26 = vpop.permute.xlu1 %887 }
 0x3fc   : > { %v883_v25 = vpop.permute.xlu0 %882 }
 0x3ff   : > { %v912_v28 = vpop.permute.xlu1 %911 }
 0x400   : > { %v907_v27 = vpop.permute.xlu0 %906 }
 0x403   : > { %v898_v38 = vpop.permute.xlu1 %897 }
 0x404   : > { %v893_v36 = vpop.permute.xlu0 %892 }
 0x407   : > { %v922_v49 = vpop.permute.xlu1 %921 }
 0x408   : > { %v917_v44 = vpop.permute.xlu0 %916 }
 0x40b   : > { %v1012_v55 = vpop.permute.xlu1 %1011 }
 0x40c   : > { %v1007_v56 = vpop.permute.xlu0 %1006 }
 0x40f   : > { %v1022_v0 = vpop.permute.xlu1 %1021 }
 0x410   : > { %v1017_v1 = vpop.permute.xlu0 %1016 }
 0x4c3   : > { %v865_v29 = vpop.f32.mrb[4].mxu0 }
 0x4c4   : > { %v900_v30 = vmul.f32 %v883_v25, %v865_v29  ;;  %v867_v31 = vpop.f32.mrb[5].mxu0 }
 0x4c5   : > { %v868_v32 = vpop.f32.mrb[6].mxu0 }
 0x4c6   : > { %v924_v33 = vadd.f32 %v907_v27, %v900_v30  ;;  %v901_v34 = vmul.f32 %v888_v26, %v868_v32  ;;  %v870_v35 = vpop.f32.mrb[7].mxu0 }
 0x4c8   : > { %v925_v37 = vadd.f32 %v912_v28, %v901_v34  ;;  %v3238_v39 = vmax.f32 %v924_v33, 0.0 }
 0x4ca   : > { %v3240_v40 = vmax.f32 %v925_v37, 0.0 }
 0x4cb   : > { %v873_v22 = vpop.f32.mrb[8].mxu0 }
 0x4cc   : > { %v902_v41 = vmul.f32 %v893_v36, %v873_v22  ;;  %v875_v42 = vpop.f32.mrb[9].mxu0  ;;  %v932_v43 = vpack.c.bf16 %v3240_v40, %v3238_v39 }
 0x4cd   : > { %v876_v45 = vpop.f32.mrb[10].mxu0 }
 0x4ce   : > { %v926_v46 = vadd.f32 %v917_v44, %v902_v41  ;;  %v903_v47 = vmul.f32 %v898_v38, %v876_v45  ;;  %v878_v48 = vpop.f32.mrb[11].mxu0  ;;  %2807 = vmatprep.subr.bf16.mxu1 %v932_v43 }
 0x4cf   : > { %2808 = vmatpush3.bf16.msra.mxu1 %v932_v43 }
 0x4d0   : > { %v927_v50 = vadd.f32 %v922_v49, %v903_v47  ;;  %v3244_v51 = vmax.f32 %v926_v46, 0.0 }
 0x4d2   : > { %v3246_v52 = vmax.f32 %v927_v50, 0.0 }
 0x4d4   : > { %v933_v53 = vpack.c.bf16 %v3246_v52, %v3244_v51 }
 0x4d6   : > { %2809 = vmatprep.subr.bf16.mxu1 %v933_v53 }
 0x4d7   : > { %2810 = vmatpush3.bf16.msra.mxu1 %v933_v53 }
 0x4d8   : > { %1377 = vmatprep.subr.bf16.mxu1 %v2925_v3 }
 0x4da   : > { %2812 = vmatmul.mubr.msk.bf16.vlgmr.msra.gmra.mrb[8].mxu1 %vm944_vm9, %v2876_v54 }
 0x4db   : > { %2676 = vmatprep.mubr.msk.bf16.mxu1 %vm623_vm3, %v2883_v10 }
 0x5ad   : > { %v2813_v57 = vpop.f32.mrb[8].mxu1 }
 0x5ae   : > { %v1002_v58 = vadd.f32 %v2813_v57, %v3244_v51  ;;  %v985_v59 = vpop.f32.mrb[9].mxu1 }
 0x5af   : > { %v1000_v60 = vadd.f32 %v985_v59, %v3238_v39  ;;  %v2814_v61 = vpop.f32.mrb[10].mxu1  ;;  %v2880_v59 = vld [vmem:[%s3899_s3 + $0x34] ss:$8 sps:$4 sm:$0xff]  }
 0x5b0   : > { %v1003_v62 = vadd.f32 %v2814_v61, %v3246_v52  ;;  %v988_v63 = vpop.f32.mrb[11].mxu1  ;;  %v1026_v4 = vadd.f32 %v1017_v1, %v1002_v58  ;;  %v2877_v58 = vld [vmem:[%s3899_s3 + $0x20] ss:$8 sps:$4 sm:$0xff]  }
 0x5b1   : > { %v1001_v2 = vadd.f32 %v988_v63, %v3240_v40  ;;  %v1024_v6 = vadd.f32 %v1007_v56, %v1000_v60  ;;  %v2882_v60 = vld [vmem:[%s3899_s3 + $0x30] ss:$8 sps:$4 sm:$0xff]  }
 0x5b2   : > { %v1027_v5 = vadd.f32 %v1022_v0, %v1003_v62 }
 0x5b3   : > { %v1025_v7 = vadd.f32 %v1012_v55, %v1001_v2 }
 0x5b4   : > { %v1033_v8 = vpack.c.bf16 %v1027_v5, %v1026_v4 }
 0x5b5   : > { %v1032_v9 = vpack.c.bf16 %v1025_v7, %v1024_v6 }
 0x5b6   : > { %1078 = vrot.lane.b32.xlu1 %v1033_v8, %s2932_s29 }
 0x5b7   : > { %1076 = vrot.lane.b32.xlu0 %v1032_v9, %s2932_s29 }
 0x628   : > { %v1079_v13 = vpop.permute.xlu1 %1078 }
 0x629   : > { %v1077_v11 = vpop.permute.xlu0 %1076  ;;  %v1085_v14 = vsel %vm1080_vm10, 0, %v1079_v13 }
 0x62a   : > { %2663 = vmatpush1.bf16.msk.msra.mxu0 %vm3262_vm11, %v1077_v11  ;;  %1091 = vrot.lane.b32.xlu1 %v1077_v11, %s2928_s20  ;;  %v1082_v12 = vsel %vm1080_vm10, 0, %v1077_v11 }
 0x62b   : > { %1089 = vrot.lane.b32.xlu0 %v1082_v12, %s2928_s20  ;;  %1178 = vmatprep.subr.bf16.mxu0 %v2925_v3 }
 0x62e   : > { %2665 = vmatpush1.bf16.msk.msra.mxu0 %vm3262_vm11, %v1079_v13  ;;  %1095 = vrot.lane.b32.xlu1 %v1079_v13, %s2928_s20 }
 0x62f   : > { %1093 = vrot.lane.b32.xlu0 %v1085_v14, %s2928_s20  ;;  %1180 = vmatprep.subr.bf16.mxu0 %v2925_v3 }
 0x632   : > { %1103 = vrot.lane.b32.xlu1 %v1077_v11, %s2930_s22 }
 0x633   : > { %1101 = vrot.lane.b32.xlu0 %v1082_v12, %s2930_s22 }
 0x636   : > { %1107 = vrot.lane.b32.xlu1 %v1079_v13, %s2930_s22 }
 0x637   : > { %1105 = vrot.lane.b32.xlu0 %v1085_v14, %s2930_s22 }
 0x63a   : > { %1115 = vrot.lane.b32.xlu1 %v1077_v11, %s2933_s30 }
 0x63b   : > { %1113 = vrot.lane.b32.xlu0 %v1082_v12, %s2933_s30 }
 0x63e   : > { %1119 = vrot.lane.b32.xlu1 %v1079_v13, %s2933_s30 }
 0x63f   : > { %1117 = vrot.lane.b32.xlu0 %v1085_v14, %s2933_s30 }
 0x642   : > { %1128 = vrot.lane.b32.xlu1 %v1077_v11, %s2934_s12 }
 0x643   : > { %1126 = vrot.lane.b32.xlu0 %v1082_v12, %s2934_s12 }
 0x646   : > { %1132 = vrot.lane.b32.xlu1 %v1079_v13, %s2934_s12 }
 0x647   : > { %1130 = vrot.lane.b32.xlu0 %v1085_v14, %s2934_s12 }
 0x64a   : > { %1141 = vrot.lane.b32.xlu1 %v1077_v11, %s2935_s14 }
 0x64b   : > { %1139 = vrot.lane.b32.xlu0 %v1082_v12, %s2935_s14 }
 0x64e   : > { %1145 = vrot.lane.b32.xlu1 %v1079_v13, %s2935_s14 }
 0x64f   : > { %1143 = vrot.lane.b32.xlu0 %v1085_v14, %s2935_s14 }
 0x652   : > { %1232 = vperm.xlu1 %2859, %v2631_v16  }
 0x653   : > { %1227 = vperm.xlu0 %2858, %v2630_v17  }
 0x656   : > { %1256 = vperm.xlu1 %2859, %v2635_v18  }
 0x657   : > { %1251 = vperm.xlu0 %2858, %v2634_v19  }
 0x65a   : > { %1242 = vperm.xlu1 %2859, %v2633_v20  }
 0x65b   : > { %1237 = vperm.xlu0 %2858, %v2632_v21  }
 0x65e   : > { %1266 = vperm.xlu1 %2859, %v2637_v23  }
 0x65f   : > { %1261 = vperm.xlu0 %2858, %v2636_v24  }
 0x69c   : > { %v1092_v25 = vpop.permute.xlu1 %1091 }
 0x69d   : > { %v1090_v26 = vpop.permute.xlu0 %1089 }
 0x69e   : > { %v1097_v27 = vsel %vm561_vm5, %v1090_v26, %v1092_v25 }
 0x69f   : > { %1181 = vmatpush1.bf16.msra.mxu0 %v1097_v27 }
 0x6a0   : > { %v1096_v28 = vpop.permute.xlu1 %1095  ;;  %1182 = vmatprep.subr.bf16.mxu0 %v2925_v3 }
 0x6a1   : > { %v1094_v29 = vpop.permute.xlu0 %1093 }
 0x6a2   : > { %v1098_v30 = vsel %vm561_vm5, %v1094_v29, %v1096_v28 }
 0x6a3   : > { %1183 = vmatpush1.bf16.msra.mxu0 %v1098_v30 }
 0x6a4   : > { %v1104_v31 = vpop.permute.xlu1 %1103  ;;  %1184 = vmatprep.subr.bf16.mxu0 %v2925_v3 }
 0x6a5   : > { %v1102_v32 = vpop.permute.xlu0 %1101 }
 0x6a6   : > { %v1109_v33 = vsel %vm587_vm7, %v1102_v32, %v1104_v31 }
 0x6a7   : > { %1185 = vmatpush1.bf16.msra.mxu0 %v1109_v33 }
 0x6a8   : > { %v1108_v34 = vpop.permute.xlu1 %1107  ;;  %1186 = vmatprep.subr.bf16.mxu0 %v2925_v3 }
 0x6a9   : > { %v1106_v35 = vpop.permute.xlu0 %1105 }
 0x6aa   : > { %v1110_v36 = vsel %vm587_vm7, %v1106_v35, %v1108_v34  ;;  %v2643_v34 = vld [vmem:[%s3903_s7 + $0x28] sm:$0xff]  ;;  %v2642_v35 = vld [vmem:[%s3903_s7 + $0x20] sm:$0xff] }
 0x6ab   : > { %1187 = vmatpush1.bf16.msra.mxu0 %v1110_v36  ;;  %v2647_v36 = vld [vmem:[%s3904_s8 + $0x28] sm:$0xff] }
 0x6ac   : > { %v1116_v37 = vpop.permute.xlu1 %1115  ;;  %1188 = vmatprep.subr.bf16.mxu0 %v2925_v3 }
 0x6ad   : > { %v1114_v38 = vpop.permute.xlu0 %1113 }
 0x6ae   : > { %v1122_v22 = vsel %vm1121_vm12, %v1114_v38, %v1116_v37  ;;  %v2646_v37 = vld [vmem:[%s3904_s8 + $0x20] sm:$0xff]  ;;  %v2645_v38 = vld [vmem:[%s3903_s7 + $0x38] sm:$0xff] }
 0x6af   : > { %1189 = vmatpush1.bf16.msra.mxu0 %v1122_v22  ;;  %v2644_v22 = vld [vmem:[%s3903_s7 + $0x30] sm:$0xff] }
 0x6b0   : > { %v1120_v41 = vpop.permute.xlu1 %1119  ;;  %1190 = vmatprep.subr.bf16.mxu0 %v2925_v3 }
 0x6b1   : > { %v1118_v42 = vpop.permute.xlu0 %1117 }
 0x6b2   : > { %v1123_v43 = vsel %vm1121_vm12, %v1118_v42, %v1120_v41  ;;  %v2649_v41 = vld [vmem:[%s3904_s8 + $0x38] sm:$0xff]  ;;  %v2648_v42 = vld [vmem:[%s3904_s8 + $0x30] sm:$0xff] }
 0x6b3   : > { %1191 = vmatpush1.bf16.msra.mxu0 %v1123_v43  ;;  %v2655_v43 = vld [vmem:[%s3906_s10 + $0x28] sm:$0xff] }
 0x6b4   : > { %v1129_v44 = vpop.permute.xlu1 %1128  ;;  %1192 = vmatprep.subr.bf16.mxu0 %v2925_v3 }
 0x6b5   : > { %v1127_v45 = vpop.permute.xlu0 %1126 }
 0x6b6   : > { %v1135_v46 = vsel %vm1134_vm13, %v1127_v45, %v1129_v44  ;;  %v2654_v44 = vld [vmem:[%s3906_s10 + $0x20] sm:$0xff]  ;;  %v2657_v45 = vld [vmem:[%s3906_s10 + $0x38] sm:$0xff] }
 0x6b7   : > { %1193 = vmatpush1.bf16.msra.mxu0 %v1135_v46  ;;  %v2656_v46 = vld [vmem:[%s3906_s10 + $0x30] sm:$0xff] }
 0x6b8   : > { %v1133_v47 = vpop.permute.xlu1 %1132  ;;  %1194 = vmatprep.subr.bf16.mxu0 %v2925_v3 }
 0x6b9   : > { %v1131_v48 = vpop.permute.xlu0 %1130 }
 0x6ba   : > { %v1136_v49 = vsel %vm1134_vm13, %v1131_v48, %v1133_v47 }
 0x6bb   : > { %1195 = vmatpush1.bf16.msra.mxu0 %v1136_v49 }
 0x6bc   : > { %v1142_v50 = vpop.permute.xlu1 %1141  ;;  %1196 = vmatprep.subr.bf16.mxu0 %v2925_v3 }
 0x6bd   : > { %v1140_v53 = vpop.permute.xlu0 %1139 }
 0x6be   : > { %v1148_v54 = vsel %vm1147_vm14, %v1140_v53, %v1142_v50 }
 0x6bf   : > { %1197 = vmatpush1.bf16.msra.mxu0 %v1148_v54 }
 0x6c0   : > { %v1146_v55 = vpop.permute.xlu1 %1145  ;;  %1198 = vmatprep.subr.bf16.mxu0 %v2925_v3 }
 0x6c1   : > { %v1144_v56 = vpop.permute.xlu0 %1143 }
 0x6c2   : > { %v1149_v57 = vsel %vm1147_vm14, %v1144_v56, %v1146_v55 }
 0x6c3   : > { %1199 = vmatpush1.bf16.msra.mxu0 %v1149_v57 }
 0x6c6   : > { %1209 = vmatmul.mubr.bf16.vlgmr.msra.gmra.mrb[12].mxu0 %v2877_v58 }
 0x6c7   : > { %2667 = vmatprep.mubr.msk.bf16.mxu0 %vm623_vm3, %v2880_v59 }
 0x6ce   : > { %1217 = vmatmul.mubr.bf16.gmra.mrb[16].mxu0 %v2882_v60 }
 0x6d1   : > { %v1233_v62 = vpop.permute.xlu1 %1232 }
 0x6d2   : > { %v1228_v61 = vpop.permute.xlu0 %1227 }
 0x6d5   : > { %v1257_v0 = vpop.permute.xlu1 %1256 }
 0x6d6   : > { %v1252_v63 = vpop.permute.xlu0 %1251 }
 0x6d9   : > { %v1243_v12 = vpop.permute.xlu1 %1242 }
 0x6da   : > { %v1238_v9 = vpop.permute.xlu0 %1237 }
 0x6dd   : > { %v1267_v25 = vpop.permute.xlu1 %1266 }
 0x6de   : > { %v1262_v19 = vpop.permute.xlu0 %1261 }
 0x799   : > { %v1210_v1 = vpop.f32.mrb[12].mxu0 }
 0x79a   : > { %v1245_v2 = vmul.f32 %v1228_v61, %v1210_v1  ;;  %v1212_v4 = vpop.f32.mrb[13].mxu0 }
 0x79b   : > { %v1213_v5 = vpop.f32.mrb[14].mxu0 }
 0x79c   : > { %v1269_v6 = vadd.f32 %v1252_v63, %v1245_v2  ;;  %v1246_v7 = vmul.f32 %v1233_v62, %v1213_v5  ;;  %v1215_v8 = vpop.f32.mrb[15].mxu0 }
 0x79e   : > { %v1270_v11 = vadd.f32 %v1257_v0, %v1246_v7  ;;  %v1273_v13 = vmax.f32 %v1269_v6, 0.0 }
 0x7a0   : > { %v1274_v14 = vmax.f32 %v1270_v11, 0.0 }
 0x7a1   : > { %v1218_v15 = vpop.f32.mrb[16].mxu0 }
 0x7a2   : > { %v1277_v16 = vpack.c.bf16 %v1274_v14, %v1273_v13  ;;  %v1247_v17 = vmul.f32 %v1238_v9, %v1218_v15  ;;  %v1220_v18 = vpop.f32.mrb[17].mxu0 }
 0x7a3   : > { %v1221_v20 = vpop.f32.mrb[18].mxu0  ;;  %v2886_v18 = vld [vmem:[%s3902_s6 + $0x34] ss:$8 sps:$4 sm:$0xff]  }
 0x7a4   : > { %v1271_v21 = vadd.f32 %v1262_v19, %v1247_v17  ;;  %v1248_v23 = vmul.f32 %v1243_v12, %v1221_v20  ;;  %v1223_v24 = vpop.f32.mrb[19].mxu0  ;;  %1281 = vrot.lane.b32.xlu0 %v1277_v16, %s2932_s29  ;;  %v2885_v17 = vld [vmem:[%s3902_s6 + $0x20] ss:$8 sps:$4 sm:$0xff]   ;;  %v2888_v19 = vld [vmem:[%s3902_s6 + $0x30] ss:$8 sps:$4 sm:$0xff]  }
 0x7a5   : > { %v2889_v20 = vld [vmem:[%s3905_s9 + $0x10] sm:$0xff]  }
 0x7a6   : > { %v1272_v26 = vadd.f32 %v1267_v25, %v1248_v23  ;;  %v1275_v27 = vmax.f32 %v1271_v21, 0.0  ;;  %2819 = vmatprep.mubr.msk.bf16.mxu0 %vm944_vm9, %v2889_v20  ;;  %v2690_v20 = vld [vmem:[%s3901_s5 + $0x40] sm:$0xff] }
 0x7a8   : > { %v1276_v28 = vmax.f32 %v1272_v26, 0.0 }
 0x7aa   : > { %v1278_v29 = vpack.c.bf16 %v1276_v28, %v1275_v27 }
 0x7ac   : > { %1283 = vrot.lane.b32.xlu1 %v1278_v29, %s2932_s29 }
 0x816   : > { %v1282_v30 = vpop.permute.xlu0 %1281 }
 0x817   : > { %2673 = vmatpush1.bf16.msk.msra.mxu1 %vm3262_vm11, %v1282_v30  ;;  %1295 = vrot.lane.b32.xlu1 %v1282_v30, %s2928_s20  ;;  %v1286_v31 = vsel %vm1080_vm10, 0, %v1282_v30 }
 0x818   : > { %1293 = vrot.lane.b32.xlu0 %v1286_v31, %s2928_s20  ;;  %1379 = vmatprep.subr.bf16.mxu1 %v2925_v3 }
 0x81e   : > { %v1284_v32 = vpop.permute.xlu1 %1283 }
 0x81f   : > { %2675 = vmatpush1.bf16.msk.msra.mxu1 %vm3262_vm11, %v1284_v32  ;;  %1299 = vrot.lane.b32.xlu1 %v1284_v32, %s2928_s20  ;;  %v1289_v33 = vsel %vm1080_vm10, 0, %v1284_v32 }
 0x820   : > { %1297 = vrot.lane.b32.xlu0 %v1289_v33, %s2928_s20  ;;  %1381 = vmatprep.subr.bf16.mxu1 %v2925_v3  ;;  %s2785_s20 = sshll.u32 %s3917_s18, 5 }
 0x821   : > { %s386_s29 = scalar_lea.vmem %s3907_s11, %s2785_s20 }
 0x823   : > { %1307 = vrot.lane.b32.xlu1 %v1282_v30, %s2930_s22 }
 0x824   : > { %1305 = vrot.lane.b32.xlu0 %v1286_v31, %s2930_s22 }
 0x827   : > { %1311 = vrot.lane.b32.xlu1 %v1284_v32, %s2930_s22 }
 0x828   : > { %1309 = vrot.lane.b32.xlu0 %v1289_v33, %s2930_s22 }
 0x82b   : > { %1319 = vrot.lane.b32.xlu1 %v1282_v30, %s2933_s30 }
 0x82c   : > { %1317 = vrot.lane.b32.xlu0 %v1286_v31, %s2933_s30 }
 0x82f   : > { %1323 = vrot.lane.b32.xlu1 %v1284_v32, %s2933_s30 }
 0x830   : > { %1321 = vrot.lane.b32.xlu0 %v1289_v33, %s2933_s30 }
 0x833   : > { %1331 = vrot.lane.b32.xlu1 %v1282_v30, %s2934_s12 }
 0x834   : > { %1329 = vrot.lane.b32.xlu0 %v1286_v31, %s2934_s12 }
 0x837   : > { %1335 = vrot.lane.b32.xlu1 %v1284_v32, %s2934_s12 }
 0x838   : > { %1333 = vrot.lane.b32.xlu0 %v1289_v33, %s2934_s12 }
 0x83b   : > { %1343 = vrot.lane.b32.xlu1 %v1282_v30, %s2935_s14 }
 0x83c   : > { %1341 = vrot.lane.b32.xlu0 %v1286_v31, %s2935_s14 }
 0x83f   : > { %1347 = vrot.lane.b32.xlu1 %v1284_v32, %s2935_s14 }
 0x840   : > { %1345 = vrot.lane.b32.xlu0 %v1289_v33, %s2935_s14  ;;  %s2940_s14 = smov 88  }
 0x843   : > { %1433 = vperm.xlu1 %2859, %v2643_v34  }
 0x844   : > { %1428 = vperm.xlu0 %2858, %v2642_v35  }
 0x847   : > { %1457 = vperm.xlu1 %2859, %v2647_v36  }
 0x848   : > { %1452 = vperm.xlu0 %2858, %v2646_v37  }
 0x84b   : > { %1443 = vperm.xlu1 %2859, %v2645_v38  }
 0x84c   : > { %1438 = vperm.xlu0 %2858, %v2644_v22  }
 0x84f   : > { %1467 = vperm.xlu1 %2859, %v2649_v41  }
 0x850   : > { %1462 = vperm.xlu0 %2858, %v2648_v42  }
 0x853   : > { %1556 = vperm.xlu1 %2859, %v2655_v43  }
 0x854   : > { %1551 = vperm.xlu0 %2858, %v2654_v44  }
 0x857   : > { %1566 = vperm.xlu1 %2859, %v2657_v45  }
 0x858   : > { %1561 = vperm.xlu0 %2858, %v2656_v46  }
 0x889   : > { %v1296_v47 = vpop.permute.xlu1 %1295 }
 0x88a   : > { %v1294_v48 = vpop.permute.xlu0 %1293 }
 0x88b   : > { %v1301_v49 = vsel %vm561_vm5, %v1294_v48, %v1296_v47 }
 0x88c   : > { %1382 = vmatpush1.bf16.msra.mxu1 %v1301_v49 }
 0x88d   : > { %1383 = vmatprep.subr.bf16.mxu1 %v2925_v3 }
 0x891   : > { %v1300_v50 = vpop.permute.xlu1 %1299 }
 0x892   : > { %v1298_v53 = vpop.permute.xlu0 %1297 }
 0x893   : > { %v1302_v54 = vsel %vm561_vm5, %v1298_v53, %v1300_v50  ;;  %vm1693_vm5 = vcmask 719872  }
 0x894   : > { %1384 = vmatpush1.bf16.msra.mxu1 %v1302_v54  ;;  %v2890_v54 = vld [vmem:[%s3905_s9 + $0x18] sm:$0xff]  }
 0x895   : > { %v1308_v55 = vpop.permute.xlu1 %1307  ;;  %1385 = vmatprep.subr.bf16.mxu1 %v2925_v3 }
 0x896   : > { %v1306_v56 = vpop.permute.xlu0 %1305 }
 0x897   : > { %v1313_v57 = vsel %vm587_vm7, %v1306_v56, %v1308_v55 }
 0x898   : > { %1386 = vmatpush1.bf16.msra.mxu1 %v1313_v57 }
 0x899   : > { %v1312_v58 = vpop.permute.xlu1 %1311  ;;  %1387 = vmatprep.subr.bf16.mxu1 %v2925_v3 }
 0x89a   : > { %v1310_v59 = vpop.permute.xlu0 %1309 }
 0x89b   : > { %v1314_v60 = vsel %vm587_vm7, %v1310_v59, %v1312_v58 }
 0x89c   : > { %1388 = vmatpush1.bf16.msra.mxu1 %v1314_v60 }
 0x89d   : > { %v1320_v61 = vpop.permute.xlu1 %1319  ;;  %1389 = vmatprep.subr.bf16.mxu1 %v2925_v3 }
 0x89e   : > { %v1318_v62 = vpop.permute.xlu0 %1317 }
 0x89f   : > { %v1325_v63 = vsel %vm1121_vm12, %v1318_v62, %v1320_v61 }
 0x8a0   : > { %1390 = vmatpush1.bf16.msra.mxu1 %v1325_v63 }
 0x8a1   : > { %v1324_v0 = vpop.permute.xlu1 %1323  ;;  %1391 = vmatprep.subr.bf16.mxu1 %v2925_v3 }
 0x8a2   : > { %v1322_v1 = vpop.permute.xlu0 %1321 }
 0x8a3   : > { %v1326_v2 = vsel %vm1121_vm12, %v1322_v1, %v1324_v0 }
 0x8a4   : > { %1392 = vmatpush1.bf16.msra.mxu1 %v1326_v2 }
 0x8a5   : > { %v1332_v4 = vpop.permute.xlu1 %1331  ;;  %1393 = vmatprep.subr.bf16.mxu1 %v2925_v3 }
 0x8a6   : > { %v1330_v5 = vpop.permute.xlu0 %1329 }
 0x8a7   : > { %v1337_v6 = vsel %vm1134_vm13, %v1330_v5, %v1332_v4 }
 0x8a8   : > { %1394 = vmatpush1.bf16.msra.mxu1 %v1337_v6 }
 0x8a9   : > { %v1336_v7 = vpop.permute.xlu1 %1335  ;;  %1395 = vmatprep.subr.bf16.mxu1 %v2925_v3 }
 0x8aa   : > { %v1334_v8 = vpop.permute.xlu0 %1333 }
 0x8ab   : > { %v1338_v9 = vsel %vm1134_vm13, %v1334_v8, %v1336_v7 }
 0x8ac   : > { %1396 = vmatpush1.bf16.msra.mxu1 %v1338_v9 }
 0x8ad   : > { %v1344_v11 = vpop.permute.xlu1 %1343  ;;  %1397 = vmatprep.subr.bf16.mxu1 %v2925_v3 }
 0x8ae   : > { %v1342_v12 = vpop.permute.xlu0 %1341 }
 0x8af   : > { %v1349_v13 = vsel %vm1147_vm14, %v1342_v12, %v1344_v11  ;;  %v2897_v11 = vld [vmem:[%s3902_s6 + $0x44] ss:$8 sps:$4 sm:$0xff]  }
 0x8b0   : > { %1398 = vmatpush1.bf16.msra.mxu1 %v1349_v13 }
 0x8b1   : > { %v1348_v14 = vpop.permute.xlu1 %1347  ;;  %1399 = vmatprep.subr.bf16.mxu1 %v2925_v3 }
 0x8b2   : > { %v1346_v15 = vpop.permute.xlu0 %1345 }
 0x8b3   : > { %v1350_v16 = vsel %vm1147_vm14, %v1346_v15, %v1348_v14 }
 0x8b4   : > { %1400 = vmatpush1.bf16.msra.mxu1 %v1350_v16  ;;  %v2893_v16 = vld [vmem:[%s3899_s3 + $0x44] ss:$8 sps:$4 sm:$0xff]  }
 0x8b5   : > { %1722 = vmatprep.subr.bf16.mxu1 %v2925_v3 }
 0x8b7   : > { %1410 = vmatmul.mubr.bf16.vlgmr.msra.gmra.mrb[12].mxu1 %v2885_v17  ;;  %v2687_v17 = vld [vmem:[%s3900_s4 + $0x48] sm:$0xff] }
 0x8b8   : > { %2677 = vmatprep.mubr.msk.bf16.mxu1 %vm623_vm3, %v2886_v18  ;;  %v2686_v18 = vld [vmem:[%s3900_s4 + $0x40] sm:$0xff] }
 0x8bf   : > { %1418 = vmatmul.mubr.bf16.gmra.mrb[16].mxu1 %v2888_v19  ;;  %v2691_v19 = vld [vmem:[%s3901_s5 + $0x48] sm:$0xff] }
 0x8c0   : > { %2722 = vmatprep.mubr.msk.bf16.mxu1 %vm623_vm3, %v2893_v16 }
 0x8c2   : > { %v1434_v23 = vpop.permute.xlu1 %1433 }
 0x8c3   : > { %v1429_v21 = vpop.permute.xlu0 %1428 }
 0x8c6   : > { %v1458_v25 = vpop.permute.xlu1 %1457 }
 0x8c7   : > { %v1453_v24 = vpop.permute.xlu0 %1452 }
 0x8ca   : > { %v1444_v34 = vpop.permute.xlu1 %1443 }
 0x8cb   : > { %v1439_v33 = vpop.permute.xlu0 %1438 }
 0x8ce   : > { %v1468_v47 = vpop.permute.xlu1 %1467 }
 0x8cf   : > { %v1463_v42 = vpop.permute.xlu0 %1462 }
 0x8d2   : > { %v1557_v55 = vpop.permute.xlu1 %1556 }
 0x8d3   : > { %v1552_v56 = vpop.permute.xlu0 %1551 }
 0x8d6   : > { %v1567_v0 = vpop.permute.xlu1 %1566 }
 0x8d7   : > { %v1562_v1 = vpop.permute.xlu0 %1561 }
 0x98a   : > { %v1411_v26 = vpop.f32.mrb[12].mxu1 }
 0x98b   : > { %v1446_v27 = vmul.f32 %v1429_v21, %v1411_v26  ;;  %v1413_v28 = vpop.f32.mrb[13].mxu1  ;;  %v2689_v21 = vld [vmem:[%s3900_s4 + $0x58] sm:$0xff] }
 0x98c   : > { %v1414_v29 = vpop.f32.mrb[14].mxu1 }
 0x98d   : > { %v1470_v30 = vadd.f32 %v1453_v24, %v1446_v27  ;;  %v1447_v31 = vmul.f32 %v1434_v23, %v1414_v29  ;;  %v1416_v32 = vpop.f32.mrb[15].mxu1  ;;  %v2688_v23 = vld [vmem:[%s3900_s4 + $0x50] sm:$0xff]  ;;  %v2693_v24 = vld [vmem:[%s3901_s5 + $0x58] sm:$0xff] }
 0x98f   : > { %v1471_v10 = vadd.f32 %v1458_v25, %v1447_v31  ;;  %v3455_v35 = vmax.f32 %v1470_v30, 0.0  ;;  %v2692_v25 = vld [vmem:[%s3901_s5 + $0x50] sm:$0xff] }
 0x991   : > { %v3457_v36 = vmax.f32 %v1471_v10, 0.0 }
 0x992   : > { %v1419_v37 = vpop.f32.mrb[16].mxu1 }
 0x993   : > { %v1448_v38 = vmul.f32 %v1439_v33, %v1419_v37  ;;  %v1421_v22 = vpop.f32.mrb[17].mxu1  ;;  %v1478_v41 = vpack.c.bf16 %v3457_v36, %v3455_v35 }
 0x994   : > { %v1422_v43 = vpop.f32.mrb[18].mxu1 }
 0x995   : > { %v1472_v44 = vadd.f32 %v1463_v42, %v1448_v38  ;;  %v1449_v45 = vmul.f32 %v1444_v34, %v1422_v43  ;;  %v1424_v46 = vpop.f32.mrb[19].mxu1  ;;  %2815 = vmatprep.subr.bf16.mxu0 %v1478_v41 }
 0x996   : > { %2816 = vmatpush3.bf16.msra.mxu0 %v1478_v41 }
 0x997   : > { %v1473_v48 = vadd.f32 %v1468_v47, %v1449_v45  ;;  %v3461_v49 = vmax.f32 %v1472_v44, 0.0 }
 0x999   : > { %v3463_v50 = vmax.f32 %v1473_v48, 0.0 }
 0x99b   : > { %v1479_v53 = vpack.c.bf16 %v3463_v50, %v3461_v49 }
 0x99d   : > { %2817 = vmatprep.subr.bf16.mxu0 %v1479_v53 }
 0x99e   : > { %2818 = vmatpush3.bf16.msra.mxu0 %v1479_v53 }
 0x99f   : > { %1923 = vmatprep.subr.bf16.mxu0 %v2925_v3 }
 0x9a1   : > { %2820 = vmatmul.mubr.msk.bf16.vlgmr.msra.gmra.mrb[20].mxu0 %vm944_vm9, %v2890_v54 }
 0x9a2   : > { %2732 = vmatprep.mubr.msk.bf16.mxu0 %vm623_vm3, %v2897_v11 }
 0xa74   : > { %v2821_v57 = vpop.f32.mrb[20].mxu0 }
 0xa75   : > { %v1547_v58 = vadd.f32 %v2821_v57, %v3461_v49  ;;  %v1530_v59 = vpop.f32.mrb[21].mxu0 }
 0xa76   : > { %v1545_v60 = vadd.f32 %v1530_v59, %v3455_v35  ;;  %v2822_v61 = vpop.f32.mrb[22].mxu0 }
 0xa77   : > { %v1548_v62 = vadd.f32 %v2822_v61, %v3463_v50  ;;  %v1533_v63 = vpop.f32.mrb[23].mxu0  ;;  %v1571_v4 = vadd.f32 %v1562_v1, %v1547_v58 }
 0xa78   : > { %v1546_v2 = vadd.f32 %v1533_v63, %v3457_v36  ;;  %v1569_v6 = vadd.f32 %v1552_v56, %v1545_v60  ;;  %v2894_v63 = vld [vmem:[%s3899_s3 + $0x54] ss:$8 sps:$4 sm:$0xff]  }
 0xa79   : > { %v1572_v5 = vadd.f32 %v1567_v0, %v1548_v62  ;;  %v2891_v62 = vld [vmem:[%s3899_s3 + $0x40] ss:$8 sps:$4 sm:$0xff]   ;;  %v2896_v0 = vld [vmem:[%s3899_s3 + $0x50] ss:$8 sps:$4 sm:$0xff]  }
 0xa7a   : > { %v1570_v7 = vadd.f32 %v1557_v55, %v1546_v2 }
 0xa7b   : > { %v1578_v8 = vpack.c.bf16 %v1572_v5, %v1571_v4 }
 0xa7c   : > { %v1577_v9 = vpack.c.bf16 %v1570_v7, %v1569_v6 }
 0xa7d   : > { %1623 = vrot.lane.b32.xlu1 %v1578_v8, %s2936_s15 }
 0xa7e   : > { %1621 = vrot.lane.b32.xlu0 %v1577_v9, %s2936_s15 }
 0xaef   : > { %v1624_v14 = vpop.permute.xlu1 %1623 }
 0xaf0   : > { %v1622_v12 = vpop.permute.xlu0 %1621  ;;  %v1630_v15 = vsel %vm1625_vm15, 0, %v1624_v14 }
 0xaf1   : > { %2719 = vmatpush1.bf16.msk.msra.mxu1 %vm3479_vm0, %v1622_v12  ;;  %1636 = vrot.lane.b32.xlu1 %v1622_v12, %s2934_s12  ;;  %v1627_v13 = vsel %vm1625_vm15, 0, %v1622_v12 }
 0xaf2   : > { %1634 = vrot.lane.b32.xlu0 %v1627_v13, %s2934_s12  ;;  %1724 = vmatprep.subr.bf16.mxu1 %v2925_v3 }
 0xaf5   : > { %2721 = vmatpush1.bf16.msk.msra.mxu1 %vm3479_vm0, %v1624_v14  ;;  %1640 = vrot.lane.b32.xlu1 %v1624_v14, %s2934_s12 }
 0xaf6   : > { %1638 = vrot.lane.b32.xlu0 %v1630_v15, %s2934_s12  ;;  %1726 = vmatprep.subr.bf16.mxu1 %v2925_v3 }
 0xaf9   : > { %1648 = vrot.lane.b32.xlu1 %v1622_v12, %s2937_s23 }
 0xafa   : > { %1646 = vrot.lane.b32.xlu0 %v1627_v13, %s2937_s23 }
 0xafd   : > { %1652 = vrot.lane.b32.xlu1 %v1624_v14, %s2937_s23 }
 0xafe   : > { %1650 = vrot.lane.b32.xlu0 %v1630_v15, %s2937_s23 }
 0xb01   : > { %1661 = vrot.lane.b32.xlu1 %v1622_v12, %s2938_s24 }
 0xb02   : > { %1659 = vrot.lane.b32.xlu0 %v1627_v13, %s2938_s24 }
 0xb05   : > { %1665 = vrot.lane.b32.xlu1 %v1624_v14, %s2938_s24 }
 0xb06   : > { %1663 = vrot.lane.b32.xlu0 %v1630_v15, %s2938_s24 }
 0xb09   : > { %1674 = vrot.lane.b32.xlu1 %v1622_v12, %s2939_s16 }
 0xb0a   : > { %1672 = vrot.lane.b32.xlu0 %v1627_v13, %s2939_s16 }
 0xb0d   : > { %1678 = vrot.lane.b32.xlu1 %v1624_v14, %s2939_s16 }
 0xb0e   : > { %1676 = vrot.lane.b32.xlu0 %v1630_v15, %s2939_s16 }
 0xb11   : > { %1687 = vrot.lane.b32.xlu1 %v1622_v12, %s2940_s14 }
 0xb12   : > { %1685 = vrot.lane.b32.xlu0 %v1627_v13, %s2940_s14 }
 0xb15   : > { %1691 = vrot.lane.b32.xlu1 %v1624_v14, %s2940_s14 }
 0xb16   : > { %1689 = vrot.lane.b32.xlu0 %v1630_v15, %s2940_s14 }
 0xb19   : > { %1778 = vperm.xlu1 %2859, %v2687_v17  }
 0xb1a   : > { %1773 = vperm.xlu0 %2858, %v2686_v18  }
 0xb1d   : > { %1802 = vperm.xlu1 %2859, %v2691_v19  }
 0xb1e   : > { %1797 = vperm.xlu0 %2858, %v2690_v20  }
 0xb21   : > { %1788 = vperm.xlu1 %2859, %v2689_v21  }
 0xb22   : > { %1783 = vperm.xlu0 %2858, %v2688_v23  }
 0xb25   : > { %1812 = vperm.xlu1 %2859, %v2693_v24  }
 0xb26   : > { %1807 = vperm.xlu0 %2858, %v2692_v25  }
 0xb63   : > { %v1637_v26 = vpop.permute.xlu1 %1636 }
 0xb64   : > { %v1635_v27 = vpop.permute.xlu0 %1634 }
 0xb65   : > { %v1642_v28 = vsel %vm1134_vm13, %v1635_v27, %v1637_v26 }
 0xb66   : > { %1727 = vmatpush1.bf16.msra.mxu1 %v1642_v28 }
 0xb67   : > { %v1641_v29 = vpop.permute.xlu1 %1640  ;;  %1728 = vmatprep.subr.bf16.mxu1 %v2925_v3 }
 0xb68   : > { %v1639_v30 = vpop.permute.xlu0 %1638 }
 0xb69   : > { %v1643_v31 = vsel %vm1134_vm13, %v1639_v30, %v1641_v29 }
 0xb6a   : > { %1729 = vmatpush1.bf16.msra.mxu1 %v1643_v31 }
 0xb6b   : > { %v1649_v32 = vpop.permute.xlu1 %1648  ;;  %1730 = vmatprep.subr.bf16.mxu1 %v2925_v3 }
 0xb6c   : > { %v1647_v33 = vpop.permute.xlu0 %1646 }
 0xb6d   : > { %v1655_v10 = vsel %vm1654_vm1, %v1647_v33, %v1649_v32 }
 0xb6e   : > { %1731 = vmatpush1.bf16.msra.mxu1 %v1655_v10 }
 0xb6f   : > { %v1653_v34 = vpop.permute.xlu1 %1652  ;;  %1732 = vmatprep.subr.bf16.mxu1 %v2925_v3 }
 0xb70   : > { %v1651_v37 = vpop.permute.xlu0 %1650 }
 0xb71   : > { %v1656_v38 = vsel %vm1654_vm1, %v1651_v37, %v1653_v34 }
 0xb72   : > { %1733 = vmatpush1.bf16.msra.mxu1 %v1656_v38 }
 0xb73   : > { %v1662_v22 = vpop.permute.xlu1 %1661  ;;  %1734 = vmatprep.subr.bf16.mxu1 %v2925_v3 }
 0xb74   : > { %v1660_v41 = vpop.permute.xlu0 %1659 }
 0xb75   : > { %v1668_v42 = vsel %vm1667_vm2, %v1660_v41, %v1662_v22  ;;  %v2699_v41 = vld [vmem:[%s3903_s7 + $0x48] sm:$0xff] }
 0xb76   : > { %1735 = vmatpush1.bf16.msra.mxu1 %v1668_v42  ;;  %v2698_v42 = vld [vmem:[%s3903_s7 + $0x40] sm:$0xff] }
 0xb77   : > { %v1666_v43 = vpop.permute.xlu1 %1665  ;;  %1736 = vmatprep.subr.bf16.mxu1 %v2925_v3 }
 0xb78   : > { %v1664_v44 = vpop.permute.xlu0 %1663 }
 0xb79   : > { %v1669_v45 = vsel %vm1667_vm2, %v1664_v44, %v1666_v43  ;;  %v2703_v43 = vld [vmem:[%s3904_s8 + $0x48] sm:$0xff]  ;;  %v2702_v44 = vld [vmem:[%s3904_s8 + $0x40] sm:$0xff] }
 0xb7a   : > { %1737 = vmatpush1.bf16.msra.mxu1 %v1669_v45  ;;  %v2701_v45 = vld [vmem:[%s3903_s7 + $0x58] sm:$0xff] }
 0xb7b   : > { %v1675_v46 = vpop.permute.xlu1 %1674  ;;  %1738 = vmatprep.subr.bf16.mxu1 %v2925_v3 }
 0xb7c   : > { %v1673_v47 = vpop.permute.xlu0 %1672 }
 0xb7d   : > { %v1681_v48 = vsel %vm1680_vm4, %v1673_v47, %v1675_v46  ;;  %v2700_v46 = vld [vmem:[%s3903_s7 + $0x50] sm:$0xff]  ;;  %v2705_v47 = vld [vmem:[%s3904_s8 + $0x58] sm:$0xff] }
 0xb7e   : > { %1739 = vmatpush1.bf16.msra.mxu1 %v1681_v48  ;;  %v2704_v48 = vld [vmem:[%s3904_s8 + $0x50] sm:$0xff] }
 0xb7f   : > { %v1679_v53 = vpop.permute.xlu1 %1678  ;;  %1740 = vmatprep.subr.bf16.mxu1 %v2925_v3 }
 0xb80   : > { %v1677_v54 = vpop.permute.xlu0 %1676 }
 0xb81   : > { %v1682_v55 = vsel %vm1680_vm4, %v1677_v54, %v1679_v53  ;;  %v2711_v53 = vld [vmem:[%s3906_s10 + $0x48] sm:$0xff]  ;;  %v2710_v54 = vld [vmem:[%s3906_s10 + $0x40] sm:$0xff] }
 0xb82   : > { %1741 = vmatpush1.bf16.msra.mxu1 %v1682_v55  ;;  %v2713_v55 = vld [vmem:[%s3906_s10 + $0x58] sm:$0xff] }
 0xb83   : > { %v1688_v56 = vpop.permute.xlu1 %1687  ;;  %1742 = vmatprep.subr.bf16.mxu1 %v2925_v3 }
 0xb84   : > { %v1686_v57 = vpop.permute.xlu0 %1685 }
 0xb85   : > { %v1694_v58 = vsel %vm1693_vm5, %v1686_v57, %v1688_v56  ;;  %v2712_v56 = vld [vmem:[%s3906_s10 + $0x50] sm:$0xff] }
 0xb86   : > { %1743 = vmatpush1.bf16.msra.mxu1 %v1694_v58 }
 0xb87   : > { %v1692_v59 = vpop.permute.xlu1 %1691  ;;  %1744 = vmatprep.subr.bf16.mxu1 %v2925_v3 }
 0xb88   : > { %v1690_v60 = vpop.permute.xlu0 %1689 }
 0xb89   : > { %v1695_v61 = vsel %vm1693_vm5, %v1690_v60, %v1692_v59 }
 0xb8a   : > { %1745 = vmatpush1.bf16.msra.mxu1 %v1695_v61 }
 0xb8d   : > { %1755 = vmatmul.mubr.bf16.vlgmr.msra.gmra.mrb[20].mxu1 %v2891_v62 }
 0xb8e   : > { %2723 = vmatprep.mubr.msk.bf16.mxu1 %vm623_vm3, %v2894_v63 }
 0xb95   : > { %1763 = vmatmul.mubr.bf16.gmra.mrb[24].mxu1 %v2896_v0 }
 0xb98   : > { %v1779_v2 = vpop.permute.xlu1 %1778 }
 0xb99   : > { %v1774_v1 = vpop.permute.xlu0 %1773 }
 0xb9c   : > { %v1803_v5 = vpop.permute.xlu1 %1802 }
 0xb9d   : > { %v1798_v4 = vpop.permute.xlu0 %1797 }
 0xba0   : > { %v1789_v17 = vpop.permute.xlu1 %1788 }
 0xba1   : > { %v1784_v15 = vpop.permute.xlu0 %1783 }
 0xba4   : > { %v1813_v30 = vpop.permute.xlu1 %1812 }
 0xba5   : > { %v1808_v25 = vpop.permute.xlu0 %1807 }
 0xc60   : > { %v1756_v6 = vpop.f32.mrb[20].mxu1 }
 0xc61   : > { %v1791_v7 = vmul.f32 %v1774_v1, %v1756_v6  ;;  %v1758_v8 = vpop.f32.mrb[21].mxu1 }
 0xc62   : > { %v1759_v9 = vpop.f32.mrb[22].mxu1 }
 0xc63   : > { %v1815_v12 = vadd.f32 %v1798_v4, %v1791_v7  ;;  %v1792_v13 = vmul.f32 %v1779_v2, %v1759_v9  ;;  %v1761_v14 = vpop.f32.mrb[23].mxu1 }
 0xc65   : > { %v1816_v16 = vadd.f32 %v1803_v5, %v1792_v13  ;;  %v1819_v18 = vmax.f32 %v1815_v12, 0.0 }
 0xc67   : > { %v1820_v19 = vmax.f32 %v1816_v16, 0.0 }
 0xc68   : > { %v1764_v20 = vpop.f32.mrb[24].mxu1 }
 0xc69   : > { %v1823_v21 = vpack.c.bf16 %v1820_v19, %v1819_v18  ;;  %v1793_v23 = vmul.f32 %v1784_v15, %v1764_v20  ;;  %v1766_v24 = vpop.f32.mrb[25].mxu1 }
 0xc6a   : > { %v1767_v26 = vpop.f32.mrb[26].mxu1 }
 0xc6b   : > { %v1817_v27 = vadd.f32 %v1808_v25, %v1793_v23  ;;  %v1794_v28 = vmul.f32 %v1789_v17, %v1767_v26  ;;  %v1769_v29 = vpop.f32.mrb[27].mxu1  ;;  %1827 = vrot.lane.b32.xlu0 %v1823_v21, %s2936_s15 }
 0xc6c   : > { %v2902_v29 = vld [vmem:[%s3902_s6 + $0x50] ss:$8 sps:$4 sm:$0xff]  }
 0xc6d   : > { %v1818_v31 = vadd.f32 %v1813_v30, %v1794_v28  ;;  %v1821_v32 = vmax.f32 %v1817_v27, 0.0  ;;  %v2899_v27 = vld [vmem:[%s3902_s6 + $0x40] ss:$8 sps:$4 sm:$0xff]   ;;  %v2900_v28 = vld [vmem:[%s3902_s6 + $0x54] ss:$8 sps:$4 sm:$0xff]  }
 0xc6e   : > { %v2903_v30 = vld [vmem:[%s3905_s9 + $0x20] sm:$0xff]  }
 0xc6f   : > { %v1822_v33 = vmax.f32 %v1818_v31, 0.0  ;;  %2827 = vmatprep.mubr.msk.bf16.mxu1 %vm944_vm9, %v2903_v30  ;;  %v2742_v30 = vld [vmem:[%s3900_s4 + $0x60] sm:$0xff] }
 0xc71   : > { %v1824_v10 = vpack.c.bf16 %v1822_v33, %v1821_v32 }
 0xc73   : > { %1829 = vrot.lane.b32.xlu1 %v1824_v10, %s2936_s15 }
 0xcdd   : > { %v1828_v34 = vpop.permute.xlu0 %1827 }
 0xcde   : > { %2729 = vmatpush1.bf16.msk.msra.mxu0 %vm3479_vm0, %v1828_v34  ;;  %1841 = vrot.lane.b32.xlu1 %v1828_v34, %s2934_s12  ;;  %v1832_v37 = vsel %vm1625_vm15, 0, %v1828_v34 }
 0xcdf   : > { %1839 = vrot.lane.b32.xlu0 %v1832_v37, %s2934_s12  ;;  %1925 = vmatprep.subr.bf16.mxu0 %v2925_v3 }
 0xce5   : > { %v1830_v38 = vpop.permute.xlu1 %1829 }
 0xce6   : > { %2731 = vmatpush1.bf16.msk.msra.mxu0 %vm3479_vm0, %v1830_v38  ;;  %1845 = vrot.lane.b32.xlu1 %v1830_v38, %s2934_s12  ;;  %v1835_v22 = vsel %vm1625_vm15, 0, %v1830_v38 }
 0xce7   : > { %1843 = vrot.lane.b32.xlu0 %v1835_v22, %s2934_s12  ;;  %1927 = vmatprep.subr.bf16.mxu0 %v2925_v3 }
 0xcea   : > { %1853 = vrot.lane.b32.xlu1 %v1828_v34, %s2937_s23 }
 0xceb   : > { %1851 = vrot.lane.b32.xlu0 %v1832_v37, %s2937_s23 }
 0xcee   : > { %1857 = vrot.lane.b32.xlu1 %v1830_v38, %s2937_s23 }
 0xcef   : > { %1855 = vrot.lane.b32.xlu0 %v1835_v22, %s2937_s23 }
 0xcf2   : > { %1865 = vrot.lane.b32.xlu1 %v1828_v34, %s2938_s24 }
 0xcf3   : > { %1863 = vrot.lane.b32.xlu0 %v1832_v37, %s2938_s24 }
 0xcf6   : > { %1869 = vrot.lane.b32.xlu1 %v1830_v38, %s2938_s24 }
 0xcf7   : > { %1867 = vrot.lane.b32.xlu0 %v1835_v22, %s2938_s24 }
 0xcfa   : > { %1877 = vrot.lane.b32.xlu1 %v1828_v34, %s2939_s16 }
 0xcfb   : > { %1875 = vrot.lane.b32.xlu0 %v1832_v37, %s2939_s16 }
 0xcfe   : > { %1881 = vrot.lane.b32.xlu1 %v1830_v38, %s2939_s16 }
 0xcff   : > { %1879 = vrot.lane.b32.xlu0 %v1835_v22, %s2939_s16 }
 0xd02   : > { %1889 = vrot.lane.b32.xlu1 %v1828_v34, %s2940_s14 }
 0xd03   : > { %1887 = vrot.lane.b32.xlu0 %v1832_v37, %s2940_s14 }
 0xd06   : > { %1893 = vrot.lane.b32.xlu1 %v1830_v38, %s2940_s14 }
 0xd07   : > { %1891 = vrot.lane.b32.xlu0 %v1835_v22, %s2940_s14 }
 0xd0a   : > { %1979 = vperm.xlu1 %2859, %v2699_v41  }
 0xd0b   : > { %1974 = vperm.xlu0 %2858, %v2698_v42  }
 0xd0e   : > { %2003 = vperm.xlu1 %2859, %v2703_v43  }
 0xd0f   : > { %1998 = vperm.xlu0 %2858, %v2702_v44  }
 0xd12   : > { %1989 = vperm.xlu1 %2859, %v2701_v45  }
 0xd13   : > { %1984 = vperm.xlu0 %2858, %v2700_v46  }
 0xd16   : > { %2013 = vperm.xlu1 %2859, %v2705_v47  }
 0xd17   : > { %2008 = vperm.xlu0 %2858, %v2704_v48  }
 0xd1a   : > { %2102 = vperm.xlu1 %2859, %v2711_v53  }
 0xd1b   : > { %2097 = vperm.xlu0 %2858, %v2710_v54  }
 0xd1e   : > { %2112 = vperm.xlu1 %2859, %v2713_v55  }
 0xd1f   : > { %2107 = vperm.xlu0 %2858, %v2712_v56  }
 0xd50   : > { %v1842_v57 = vpop.permute.xlu1 %1841 }
 0xd51   : > { %v1840_v58 = vpop.permute.xlu0 %1839 }
 0xd52   : > { %v1847_v59 = vsel %vm1134_vm13, %v1840_v58, %v1842_v57 }
 0xd53   : > { %1928 = vmatpush1.bf16.msra.mxu0 %v1847_v59 }
 0xd54   : > { %1929 = vmatprep.subr.bf16.mxu0 %v2925_v3 }
 0xd58   : > { %v1846_v60 = vpop.permute.xlu1 %1845 }
 0xd59   : > { %v1844_v61 = vpop.permute.xlu0 %1843 }
 0xd5a   : > { %v1848_v62 = vsel %vm1134_vm13, %v1844_v61, %v1846_v60 }
 0xd5b   : > { %1930 = vmatpush1.bf16.msra.mxu0 %v1848_v62 }
 0xd5c   : > { %v1854_v63 = vpop.permute.xlu1 %1853  ;;  %1931 = vmatprep.subr.bf16.mxu0 %v2925_v3 }
 0xd5d   : > { %v1852_v0 = vpop.permute.xlu0 %1851 }
 0xd5e   : > { %v1859_v1 = vsel %vm1654_vm1, %v1852_v0, %v1854_v63 }
 0xd5f   : > { %1932 = vmatpush1.bf16.msra.mxu0 %v1859_v1 }
 0xd60   : > { %v1858_v2 = vpop.permute.xlu1 %1857  ;;  %1933 = vmatprep.subr.bf16.mxu0 %v2925_v3 }
 0xd61   : > { %v1856_v4 = vpop.permute.xlu0 %1855 }
 0xd62   : > { %v1860_v5 = vsel %vm1654_vm1, %v1856_v4, %v1858_v2  ;;  %v2904_v2 = vld [vmem:[%s3905_s9 + $0x28] sm:$0xff]  }
 0xd63   : > { %1934 = vmatpush1.bf16.msra.mxu0 %v1860_v5 }
 0xd64   : > { %v1866_v6 = vpop.permute.xlu1 %1865  ;;  %1935 = vmatprep.subr.bf16.mxu0 %v2925_v3 }
 0xd65   : > { %v1864_v7 = vpop.permute.xlu0 %1863 }
 0xd66   : > { %v1871_v8 = vsel %vm1667_vm2, %v1864_v7, %v1866_v6 }
 0xd67   : > { %1936 = vmatpush1.bf16.msra.mxu0 %v1871_v8 }
 0xd68   : > { %v1870_v9 = vpop.permute.xlu1 %1869  ;;  %1937 = vmatprep.subr.bf16.mxu0 %v2925_v3 }
 0xd69   : > { %v1868_v12 = vpop.permute.xlu0 %1867 }
 0xd6a   : > { %v1872_v13 = vsel %vm1667_vm2, %v1868_v12, %v1870_v9 }
 0xd6b   : > { %1938 = vmatpush1.bf16.msra.mxu0 %v1872_v13 }
 0xd6c   : > { %v1878_v14 = vpop.permute.xlu1 %1877  ;;  %1939 = vmatprep.subr.bf16.mxu0 %v2925_v3 }
 0xd6d   : > { %v1876_v15 = vpop.permute.xlu0 %1875 }
 0xd6e   : > { %v1883_v16 = vsel %vm1680_vm4, %v1876_v15, %v1878_v14 }
 0xd6f   : > { %1940 = vmatpush1.bf16.msra.mxu0 %v1883_v16 }
 0xd70   : > { %v1882_v17 = vpop.permute.xlu1 %1881  ;;  %1941 = vmatprep.subr.bf16.mxu0 %v2925_v3 }
 0xd71   : > { %v1880_v18 = vpop.permute.xlu0 %1879 }
 0xd72   : > { %v1884_v19 = vsel %vm1680_vm4, %v1880_v18, %v1882_v17 }
 0xd73   : > { %1942 = vmatpush1.bf16.msra.mxu0 %v1884_v19 }
 0xd74   : > { %v1890_v20 = vpop.permute.xlu1 %1889  ;;  %1943 = vmatprep.subr.bf16.mxu0 %v2925_v3 }
 0xd75   : > { %v1888_v21 = vpop.permute.xlu0 %1887 }
 0xd76   : > { %v1895_v23 = vsel %vm1693_vm5, %v1888_v21, %v1890_v20 }
 0xd77   : > { %1944 = vmatpush1.bf16.msra.mxu0 %v1895_v23 }
 0xd78   : > { %v1894_v24 = vpop.permute.xlu1 %1893  ;;  %1945 = vmatprep.subr.bf16.mxu0 %v2925_v3 }
 0xd79   : > { %v1892_v25 = vpop.permute.xlu0 %1891 }
 0xd7a   : > { %v1896_v26 = vsel %vm1693_vm5, %v1892_v25, %v1894_v24 }
 0xd7b   : > { %1946 = vmatpush1.bf16.msra.mxu0 %v1896_v26 }
 0xd7c   : > { %2234 = vmatprep.subr.bf16.mxu0 %v2925_v3 }
 0xd7e   : > { %1956 = vmatmul.mubr.bf16.vlgmr.msra.gmra.mrb[24].mxu0 %v2899_v27 }
 0xd7f   : > { %2733 = vmatprep.mubr.msk.bf16.mxu0 %vm623_vm3, %v2900_v28  ;;  %2235 = vmatpush1.bf16.msra.mxu0 %v2925_v3 }
 0xd80   : > { %2236 = vmatprep.subr.bf16.mxu0 %v2925_v3 }
 0xd83   : > { %2237 = vmatpush1.bf16.msra.mxu0 %v2925_v3 }
 0xd84   : > { %2238 = vmatprep.subr.bf16.mxu0 %v2925_v3 }
 0xd86   : > { %1964 = vmatmul.mubr.bf16.gmra.mrb[28].mxu0 %v2902_v29  ;;  %v2743_v29 = vld [vmem:[%s3900_s4 + $0x68] sm:$0xff] }
 0xd89   : > { %v1980_v32 = vpop.permute.xlu1 %1979 }
 0xd8a   : > { %v1975_v31 = vpop.permute.xlu0 %1974 }
 0xd8d   : > { %v2004_v10 = vpop.permute.xlu1 %2003 }
 0xd8e   : > { %v1999_v33 = vpop.permute.xlu0 %1998 }
 0xd91   : > { %v1990_v45 = vpop.permute.xlu1 %1989 }
 0xd92   : > { %v1985_v43 = vpop.permute.xlu0 %1984 }
 0xd95   : > { %v2014_v61 = vpop.permute.xlu1 %2013 }
 0xd96   : > { %v2009_v56 = vpop.permute.xlu0 %2008 }
 0xd99   : > { %v2103_v4 = vpop.permute.xlu1 %2102 }
 0xd9a   : > { %v2098_v5 = vpop.permute.xlu0 %2097 }
 0xd9d   : > { %v2113_v15 = vpop.permute.xlu1 %2112 }
 0xd9e   : > { %v2108_v16 = vpop.permute.xlu0 %2107 }
 0xe51   : > { %v1957_v34 = vpop.f32.mrb[24].mxu0 }
 0xe52   : > { %v1992_v37 = vmul.f32 %v1975_v31, %v1957_v34  ;;  %v1959_v38 = vpop.f32.mrb[25].mxu0  ;;  %v2747_v31 = vld [vmem:[%s3901_s5 + $0x68] sm:$0xff]  ;;  %v2744_v34 = vld [vmem:[%s3900_s4 + $0x70] sm:$0xff] }
 0xe53   : > { %v1960_v22 = vpop.f32.mrb[26].mxu0  ;;  %v2748_v38 = vld [vmem:[%s3901_s5 + $0x70] sm:$0xff] }
 0xe54   : > { %v2016_v11 = vadd.f32 %v1999_v33, %v1992_v37  ;;  %v1993_v41 = vmul.f32 %v1980_v32, %v1960_v22  ;;  %v1962_v42 = vpop.f32.mrb[27].mxu0  ;;  %v2746_v32 = vld [vmem:[%s3901_s5 + $0x60] sm:$0xff]  ;;  %v2745_v33 = vld [vmem:[%s3900_s4 + $0x78] sm:$0xff] }
 0xe55   : > { %v2749_v37 = vld [vmem:[%s3901_s5 + $0x78] sm:$0xff] }
 0xe56   : > { %v2017_v44 = vadd.f32 %v2004_v10, %v1993_v41  ;;  %v3676_v46 = vmax.f32 %v2016_v11, 0.0  ;;  %v2907_v10 = vld [vmem:[%s3899_s3 + $0x64] ss:$8 sps:$4 sm:$0xff]  }
 0xe57   : > { %2770 = vmatprep.mubr.msk.bf16.mxu0 %vm623_vm3, %v2907_v10 }
 0xe58   : > { %v3678_v47 = vmax.f32 %v2017_v44, 0.0 }
 0xe59   : > { %v1965_v48 = vpop.f32.mrb[28].mxu0 }
 0xe5a   : > { %v1994_v53 = vmul.f32 %v1985_v43, %v1965_v48  ;;  %v1967_v54 = vpop.f32.mrb[29].mxu0  ;;  %v2024_v55 = vpack.c.bf16 %v3678_v47, %v3676_v46 }
 0xe5b   : > { %v1968_v57 = vpop.f32.mrb[30].mxu0 }
 0xe5c   : > { %v2018_v58 = vadd.f32 %v2009_v56, %v1994_v53  ;;  %v1995_v59 = vmul.f32 %v1990_v45, %v1968_v57  ;;  %v1970_v60 = vpop.f32.mrb[31].mxu0  ;;  %2823 = vmatprep.subr.bf16.mxu1 %v2024_v55 }
 0xe5d   : > { %2824 = vmatpush3.bf16.msra.mxu1 %v2024_v55  ;;  %v2914_v60 = vld [vmem:[%s3902_s6 + $0x74] ss:$8 sps:$4 sm:$0xff]  }
 0xe5e   : > { %v2019_v62 = vadd.f32 %v2014_v61, %v1995_v59  ;;  %v3682_v63 = vmax.f32 %v2018_v58, 0.0 }
 0xe60   : > { %v3684_v0 = vmax.f32 %v2019_v62, 0.0 }
 0xe62   : > { %v2025_v1 = vpack.c.bf16 %v3684_v0, %v3682_v63 }
 0xe64   : > { %2825 = vmatprep.subr.bf16.mxu1 %v2025_v1 }
 0xe65   : > { %2826 = vmatpush3.bf16.msra.mxu1 %v2025_v1 }
 0xe66   : > { %2407 = vmatprep.subr.bf16.mxu1 %v2925_v3 }
 0xe68   : > { %2828 = vmatmul.mubr.msk.bf16.vlgmr.msra.gmra.mrb[28].mxu1 %vm944_vm9, %v2904_v2 }
 0xe69   : > { %2408 = vmatpush1.bf16.msra.mxu1 %v2925_v3 }
 0xe6a   : > { %2409 = vmatprep.subr.bf16.mxu1 %v2925_v3 }
 0xe6d   : > { %2410 = vmatpush1.bf16.msra.mxu1 %v2925_v3 }
 0xe6e   : > { %2411 = vmatprep.subr.bf16.mxu1 %v2925_v3 }
 0xf3b   : > { %v2829_v6 = vpop.f32.mrb[28].mxu1 }
 0xf3c   : > { %v2093_v7 = vadd.f32 %v2829_v6, %v3682_v63  ;;  %v2076_v8 = vpop.f32.mrb[29].mxu1  ;;  %v2910_v6 = vld [vmem:[%s3899_s3 + $0x70] ss:$8 sps:$4 sm:$0xff]  }
 0xf3d   : > { %v2091_v9 = vadd.f32 %v2076_v8, %v3676_v46  ;;  %v2830_v12 = vpop.f32.mrb[30].mxu1 }
 0xf3e   : > { %v2094_v13 = vadd.f32 %v2830_v12, %v3684_v0  ;;  %v2079_v14 = vpop.f32.mrb[31].mxu1  ;;  %v2117_v18 = vadd.f32 %v2108_v16, %v2093_v7 }
 0xf3f   : > { %v2092_v17 = vadd.f32 %v2079_v14, %v3678_v47  ;;  %v2115_v20 = vadd.f32 %v2098_v5, %v2091_v9  ;;  %v2908_v5 = vld [vmem:[%s3899_s3 + $0x74] ss:$8 sps:$4 sm:$0xff]  }
 0xf40   : > { %v2118_v19 = vadd.f32 %v2113_v15, %v2094_v13 }
 0xf41   : > { %v2116_v21 = vadd.f32 %v2103_v4, %v2092_v17  ;;  %v2905_v4 = vld [vmem:[%s3899_s3 + $0x60] ss:$8 sps:$4 sm:$0xff]  }
 0xf42   : > { %v2124_v23 = vpack.c.bf16 %v2118_v19, %v2117_v18 }
 0xf43   : > { %v2123_v24 = vpack.c.bf16 %v2116_v21, %v2115_v20 }
 0xf44   : > { %2159 = vrot.lane.b32.xlu1 %v2124_v23, %s2941_s26 }
 0xf45   : > { %2157 = vrot.lane.b32.xlu0 %v2123_v24, %s2941_s26 }
 0xf49   : > { %2170 = vrot.lane.b32.xlu0 %v2925_v3, %s2939_s16 }
 0xfb6   : > { %v3705_v25 = vpop.permute.xlu1 %2159 }
 0xfb7   : > { %v2158_v26 = vpop.permute.xlu0 %2157  ;;  %v2165_v27 = vsel %vm944_vm9, 0, %v3705_v25 }
 0xfb8   : > { %2174 = vrot.lane.b32.xlu0 %v2165_v27, %s2939_s16  ;;  %v2162_v28 = vsel %vm944_vm9, 0, %v2158_v26 }
 0xfb9   : > { %2172 = vrot.lane.b32.xlu1 %v2162_v28, %s2939_s16 }
 0xfbb   : > { %v3751_v22 = vpop.permute.xlu0 %2170 }
 0xfbc   : > { %2182 = vrot.lane.b32.xlu0 %v2162_v28, %s2942_s27 }
 0xfbd   : > { %2180 = vrot.lane.b32.xlu1 %v2925_v3, %s2942_s27 }
 0xfc0   : > { %2191 = vrot.lane.b32.xlu0 %v2925_v3, %s2941_s26 }
 0xfc1   : > { %2184 = vrot.lane.b32.xlu1 %v2165_v27, %s2942_s27 }
 0xfc4   : > { %2195 = vrot.lane.b32.xlu0 %v2165_v27, %s2941_s26 }
 0xfc5   : > { %2193 = vrot.lane.b32.xlu1 %v2162_v28, %s2941_s26 }
 0xfc8   : > { %2204 = vrot.lane.b32.xlu0 %v3705_v25, %s2939_s16 }
 0xfc9   : > { %2202 = vrot.lane.b32.xlu1 %v2158_v26, %s2939_s16 }
 0xfcc   : > { %2290 = vperm.xlu0 %2858, %v2743_v29  }
 0xfcd   : > { %2285 = vperm.xlu1 %2859, %v2742_v30  }
 0xfd0   : > { %2314 = vperm.xlu0 %2858, %v2747_v31  }
 0xfd1   : > { %2309 = vperm.xlu1 %2859, %v2746_v32  }
 0xfd4   : > { %2300 = vperm.xlu0 %2858, %v2745_v33  }
 0xfd5   : > { %2295 = vperm.xlu1 %2859, %v2744_v34  }
 0xfd8   : > { %2324 = vperm.xlu0 %2858, %v2749_v37  }
 0xfd9   : > { %2319 = vperm.xlu1 %2859, %v2748_v38  }
0x102a   : > { %v2175_v11 = vpop.permute.xlu0 %2174 }
0x102b   : > { %v2173_v41 = vpop.permute.xlu1 %2172  ;;  %v2177_v44 = vsel %vm1680_vm4, %v3751_v22, %v2175_v11 }
0x102c   : > { %v2176_v42 = vsel %vm1680_vm4, %v3751_v22, %v2173_v41 }
0x102d   : > { %2239 = vmatpush1.bf16.msra.mxu0 %v2176_v42 }
0x102e   : > { %2240 = vmatprep.subr.bf16.mxu0 %v2925_v3  ;;  %v2183_v45 = vpop.permute.xlu0 %2182 }
0x102f   : > { %v3756_v43 = vpop.permute.xlu1 %2180 }
0x1030   : > { %v2187_v53 = vsel %vm623_vm3, %v3756_v43, %v2183_v45 }
0x1031   : > { %2241 = vmatpush1.bf16.msra.mxu0 %v2177_v44 }
0x1032   : > { %2242 = vmatprep.subr.bf16.mxu0 %v2925_v3  ;;  %v3764_v54 = vpop.permute.xlu0 %2191 }
0x1033   : > { %v2185_v48 = vpop.permute.xlu1 %2184 }
0x1034   : > { %v2188_v55 = vsel %vm623_vm3, %v3756_v43, %v2185_v48 }
0x1035   : > { %2243 = vmatpush1.bf16.msra.mxu0 %v2187_v53  ;;  %v2754_v53 = vld [vmem:[%s3903_s7 + $0x60] sm:$0xff] }
0x1036   : > { %2244 = vmatprep.subr.bf16.mxu0 %v2925_v3  ;;  %v2196_v58 = vpop.permute.xlu0 %2195 }
0x1037   : > { %v2194_v56 = vpop.permute.xlu1 %2193  ;;  %v2199_v59 = vsel %vm944_vm9, %v3764_v54, %v2196_v58  ;;  %v2757_v58 = vld [vmem:[%s3903_s7 + $0x78] sm:$0xff] }
0x1038   : > { %v2198_v57 = vsel %vm944_vm9, %v3764_v54, %v2194_v56  ;;  %v2755_v56 = vld [vmem:[%s3903_s7 + $0x68] sm:$0xff] }
0x1039   : > { %2245 = vmatpush1.bf16.msra.mxu0 %v2188_v55  ;;  %v2756_v55 = vld [vmem:[%s3903_s7 + $0x70] sm:$0xff] }
0x103a   : > { %2246 = vmatprep.subr.bf16.mxu0 %v2925_v3  ;;  %v2205_v1 = vpop.permute.xlu0 %2204 }
0x103b   : > { %v2203_v61 = vpop.permute.xlu1 %2202  ;;  %v2207_v2 = vsel %vm1680_vm4, %v2175_v11, %v2205_v1  ;;  %v2761_v1 = vld [vmem:[%s3904_s8 + $0x78] sm:$0xff] }
0x103c   : > { %v2206_v62 = vsel %vm1680_vm4, %v2173_v41, %v2203_v61  ;;  %v2911_v61 = vld [vmem:[%s3902_s6 + $0x64] ss:$8 sps:$4 sm:$0xff]  }
0x103d   : > { %2247 = vmatpush1.bf16.msra.mxu0 %v2198_v57  ;;  %v2758_v57 = vld [vmem:[%s3904_s8 + $0x60] sm:$0xff]  ;;  %2780 = vmatprep.mubr.msk.bf16.mxu1 %vm623_vm3, %v2911_v61 }
0x103e   : > { %2248 = vmatprep.subr.bf16.mxu0 %v2925_v3 }
0x1041   : > { %2249 = vmatpush1.bf16.msra.mxu0 %v2199_v59  ;;  %v2760_v59 = vld [vmem:[%s3904_s8 + $0x70] sm:$0xff] }
0x1042   : > { %2250 = vmatprep.subr.bf16.mxu0 %v2925_v3 }
0x1045   : > { %2767 = vmatpush1.bf16.msk.msra.mxu0 %vm3776_vm6, %v2158_v26 }
0x1046   : > { %2252 = vmatprep.subr.bf16.mxu0 %v2925_v3 }
0x1049   : > { %2769 = vmatpush1.bf16.msk.msra.mxu0 %vm3776_vm6, %v3705_v25 }
0x104a   : > { %2254 = vmatprep.subr.bf16.mxu0 %v2925_v3 }
0x104b   : > { %v2291_v8 = vpop.permute.xlu0 %2290 }
0x104c   : > { %v2286_v7 = vpop.permute.xlu1 %2285 }
0x104d   : > { %2255 = vmatpush1.bf16.msra.mxu0 %v2206_v62  ;;  %v2759_v62 = vld [vmem:[%s3904_s8 + $0x68] sm:$0xff] }
0x104e   : > { %2256 = vmatprep.subr.bf16.mxu0 %v2925_v3 }
0x104f   : > { %v2315_v12 = vpop.permute.xlu0 %2314 }
0x1050   : > { %v2310_v9 = vpop.permute.xlu1 %2309 }
0x1051   : > { %2257 = vmatpush1.bf16.msra.mxu0 %v2207_v2 }
0x1053   : > { %v2301_v23 = vpop.permute.xlu0 %2300 }
0x1054   : > { %2267 = vmatmul.mubr.bf16.vlgmr.msra.gmra.mrb[32].mxu0 %v2905_v4  ;;  %v2296_v20 = vpop.permute.xlu1 %2295 }
0x1055   : > { %2771 = vmatprep.mubr.msk.bf16.mxu0 %vm623_vm3, %v2908_v5 }
0x1057   : > { %v2325_v34 = vpop.permute.xlu0 %2324 }
0x1058   : > { %v2320_v30 = vpop.permute.xlu1 %2319 }
0x105c   : > { %2275 = vmatmul.mubr.bf16.gmra.mrb[36].mxu0 %v2910_v6 }
0x1127   : > { %v2268_v13 = vpop.f32.mrb[32].mxu0 }
0x1128   : > { %v2303_v14 = vmul.f32 %v2286_v7, %v2268_v13  ;;  %v2270_v15 = vpop.f32.mrb[33].mxu0 }
0x1129   : > { %v2271_v16 = vpop.f32.mrb[34].mxu0 }
0x112a   : > { %v2327_v17 = vadd.f32 %v2310_v9, %v2303_v14  ;;  %v2304_v18 = vmul.f32 %v2291_v8, %v2271_v16  ;;  %v2273_v19 = vpop.f32.mrb[35].mxu0 }
0x112b   : > { %v2916_v19 = vld [vmem:[%s3902_s6 + $0x70] ss:$8 sps:$4 sm:$0xff]  }
0x112c   : > { %v2328_v21 = vadd.f32 %v2315_v12, %v2304_v18  ;;  %v2331_v24 = vmax.f32 %v2327_v17, 0.0  ;;  %v2913_v18 = vld [vmem:[%s3902_s6 + $0x60] ss:$8 sps:$4 sm:$0xff]  }
0x112e   : > { %v2332_v25 = vmax.f32 %v2328_v21, 0.0 }
0x112f   : > { %v2276_v26 = vpop.f32.mrb[36].mxu0 }
0x1130   : > { %v2335_v27 = vpack.c.bf16 %v2332_v25, %v2331_v24  ;;  %v2305_v28 = vmul.f32 %v2296_v20, %v2276_v26  ;;  %v2278_v29 = vpop.f32.mrb[37].mxu0 }
0x1131   : > { %v2279_v31 = vpop.f32.mrb[38].mxu0  ;;  %v1573_v29 = vadd.f32 %v3455_v35, %v3238_v39 }
0x1132   : > { %v2329_v32 = vadd.f32 %v2320_v30, %v2305_v28  ;;  %v2306_v33 = vmul.f32 %v2301_v23, %v2279_v31  ;;  %2339 = vrot.lane.b32.xlu1 %v2335_v27, %s2941_s26  ;;  %v2281_v10 = vpop.f32.mrb[39].mxu0 }
0x1133   : > { %v1574_v10 = vadd.f32 %v3457_v36, %v3240_v40 }
0x1134   : > { %v2330_v37 = vadd.f32 %v2325_v34, %v2306_v33  ;;  %v2333_v38 = vmax.f32 %v2329_v32, 0.0  ;;  %v2119_v34 = vadd.f32 %v3676_v46, %v1573_v29 }
0x1136   : > { %v2334_v11 = vmax.f32 %v2330_v37, 0.0 }
0x1138   : > { %v2336_v41 = vpack.c.bf16 %v2334_v11, %v2333_v38 }
0x113a   : > { %2341 = vrot.lane.b32.xlu0 %v2336_v41, %s2941_s26  ;;  %v2120_v41 = vadd.f32 %v3678_v47, %v1574_v10  ;;  %v1576_v47 = vadd.f32 %v3463_v50, %v3246_v52 }
0x11a4   : > { %v2340_v42 = vpop.permute.xlu1 %2339 }
0x11a5   : > { %v2344_v44 = vsel %vm944_vm9, 0, %v2340_v42 }
0x11a6   : > { %2351 = vrot.lane.b32.xlu1 %v2344_v44, %s2939_s16 }
0x11aa   : > { %2359 = vrot.lane.b32.xlu1 %v2344_v44, %s2942_s27 }
0x11ac   : > { %v2342_v45 = vpop.permute.xlu0 %2341 }
0x11ad   : > { %v2347_v48 = vsel %vm944_vm9, 0, %v2342_v45 }
0x11ae   : > { %2353 = vrot.lane.b32.xlu0 %v2347_v48, %s2939_s16  ;;  %2367 = vrot.lane.b32.xlu1 %v2344_v44, %s2941_s26 }
0x11b2   : > { %2361 = vrot.lane.b32.xlu0 %v2347_v48, %s2942_s27  ;;  %2375 = vrot.lane.b32.xlu1 %v2340_v42, %s2939_s16 }
0x11b6   : > { %2369 = vrot.lane.b32.xlu0 %v2347_v48, %s2941_s26  ;;  %2458 = vperm.xlu1 %2859, %v2754_v53  }
0x11ba   : > { %2377 = vrot.lane.b32.xlu0 %v2342_v45, %s2939_s16  ;;  %2468 = vperm.xlu1 %2859, %v2756_v55   ;;  %v1575_v55 = vadd.f32 %v3461_v49, %v3244_v51 }
0x11be   : > { %2463 = vperm.xlu0 %2858, %v2755_v56   ;;  %2482 = vperm.xlu1 %2859, %v2758_v57   ;;  %v2121_v57 = vadd.f32 %v3682_v63, %v1575_v55 }
0x11c2   : > { %2473 = vperm.xlu0 %2858, %v2757_v58   ;;  %2492 = vperm.xlu1 %2859, %v2760_v59  }
0x11c6   : > { %2487 = vperm.xlu0 %2858, %v2759_v62   ;;  %v2122_v62 = vadd.f32 %v3684_v0, %v1576_v47 }
0x11ca   : > { %2497 = vperm.xlu0 %2858, %v2761_v1  }
0x1218   : > { %v2352_v2 = vpop.permute.xlu1 %2351 }
0x1219   : > { %v2355_v4 = vsel %vm1680_vm4, %v3751_v22, %v2352_v2 }
0x121a   : > { %2412 = vmatpush1.bf16.msra.mxu1 %v2355_v4 }
0x121b   : > { %2413 = vmatprep.subr.bf16.mxu1 %v2925_v3 }
0x121c   : > { %v2360_v7 = vpop.permute.xlu1 %2359 }
0x121d   : > { %v2363_v8 = vsel %vm623_vm3, %v3756_v43, %v2360_v7 }
0x1220   : > { %v2354_v5 = vpop.permute.xlu0 %2353  ;;  %v2368_v13 = vpop.permute.xlu1 %2367 }
0x1221   : > { %v2356_v6 = vsel %vm1680_vm4, %v3751_v22, %v2354_v5  ;;  %v2371_v22 = vsel %vm944_vm9, %v3764_v54, %v2368_v13 }
0x1222   : > { %2414 = vmatpush1.bf16.msra.mxu1 %v2356_v6 }
0x1223   : > { %2415 = vmatprep.subr.bf16.mxu1 %v2925_v3 }
0x1224   : > { %v2362_v9 = vpop.permute.xlu0 %2361 }
0x1225   : > { %v2364_v12 = vsel %vm623_vm3, %v3756_v43, %v2362_v9  ;;  %v2376_v43 = vpop.permute.xlu1 %2375 }
0x1226   : > { %2416 = vmatpush1.bf16.msra.mxu1 %v2363_v8  ;;  %v2379_v16 = vsel %vm1680_vm4, %v2352_v2, %v2376_v43 }
0x1227   : > { %2417 = vmatprep.subr.bf16.mxu1 %v2925_v3 }
0x1228   : > { %v2370_v14 = vpop.permute.xlu0 %2369 }
0x1229   : > { %v2372_v15 = vsel %vm944_vm9, %v3764_v54, %v2370_v14 }
0x122a   : > { %2418 = vmatpush1.bf16.msra.mxu1 %v2364_v12 }
0x122b   : > { %2419 = vmatprep.subr.bf16.mxu1 %v2925_v3 }
0x122c   : > { %v2378_v17 = vpop.permute.xlu0 %2377 }
0x122d   : > { %v2380_v54 = vsel %vm1680_vm4, %v2354_v5, %v2378_v17 }
0x122e   : > { %2420 = vmatpush1.bf16.msra.mxu1 %v2371_v22 }
0x122f   : > { %2421 = vmatprep.subr.bf16.mxu1 %v2925_v3 }
0x1232   : > { %2422 = vmatpush1.bf16.msra.mxu1 %v2372_v15 }
0x1233   : > { %2423 = vmatprep.subr.bf16.mxu1 %v2925_v3 }
0x1236   : > { %2777 = vmatpush1.bf16.msk.msra.mxu1 %vm3776_vm6, %v2340_v42 }
0x1237   : > { %2425 = vmatprep.subr.bf16.mxu1 %v2925_v3 }
0x123a   : > { %2779 = vmatpush1.bf16.msk.msra.mxu1 %vm3776_vm6, %v2342_v45 }
0x123b   : > { %2427 = vmatprep.subr.bf16.mxu1 %v2925_v3 }
0x123d   : > { %v2464_v20 = vpop.permute.xlu0 %2463 }
0x123e   : > { %2428 = vmatpush1.bf16.msra.mxu1 %v2379_v16 }
0x123f   : > { %2429 = vmatprep.subr.bf16.mxu1 %v2925_v3  ;;  %v2459_v3 = vpop.permute.xlu1 %2458 }
0x1241   : > { %v2474_v23 = vpop.permute.xlu0 %2473 }
0x1242   : > { %2430 = vmatpush1.bf16.msra.mxu1 %v2380_v54 }
0x1243   : > { %v2469_v21 = vpop.permute.xlu1 %2468 }
0x1245   : > { %2440 = vmatmul.mubr.bf16.vlgmr.msra.gmra.mrb[32].mxu1 %v2913_v18  ;;  %v2488_v33 = vpop.permute.xlu0 %2487 }
0x1246   : > { %2781 = vmatprep.mubr.msk.bf16.mxu1 %vm623_vm3, %v2914_v60  ;;  %vm2528_vm3 = vcmask 7168  }
0x1247   : > { %v2483_v27 = vpop.permute.xlu1 %2482 }
0x1249   : > { %v2498_v56 = vpop.permute.xlu0 %2497 }
0x124b   : > { %v2493_v39 = vpop.permute.xlu1 %2492 }
0x124d   : > { %2448 = vmatmul.mubr.bf16.gmra.mrb[36].mxu1 %v2916_v19 }
0x1318   : > { %v2441_v24 = vpop.f32.mrb[32].mxu1 }
0x1319   : > { %v2476_v25 = vmul.f32 %v2459_v3, %v2441_v24  ;;  %v2443_v26 = vpop.f32.mrb[33].mxu1 }
0x131a   : > { %v2444_v28 = vpop.f32.mrb[34].mxu1 }
0x131b   : > { %v2500_v30 = vadd.f32 %v2483_v27, %v2476_v25  ;;  %v2477_v31 = vmul.f32 %v2464_v20, %v2444_v28  ;;  %v2446_v32 = vpop.f32.mrb[35].mxu1 }
0x131d   : > { %v2504_v37 = vmax.f32 %v2500_v30, 0.0  ;;  %v2501_v38 = vadd.f32 %v2488_v33, %v2477_v31 }
0x131f   : > { %v2508_v11 = vadd.f32 %v2504_v37, %v2119_v34  ;;  %v2505_v42 = vmax.f32 %v2501_v38, 0.0 }
0x1320   : > { %v2449_v44 = vpop.f32.mrb[36].mxu1 }
0x1321   : > { %v2509_v45 = vadd.f32 %v2505_v42, %v2120_v41  ;;  %v2478_v48 = vmul.f32 %v2469_v21, %v2449_v44  ;;  %v2451_v53 = vpop.f32.mrb[37].mxu1  ;;  %2516 = vrot.lane.b32.xlu1 %v2508_v11, %s2943_s25 }
0x1322   : > { %v2452_v35 = vpop.f32.mrb[38].mxu1 }
0x1323   : > { %v2502_v40 = vadd.f32 %v2493_v39, %v2478_v48  ;;  %v2479_v36 = vmul.f32 %v2474_v23, %v2452_v35  ;;  %2518 = vrot.lane.b32.xlu0 %v2509_v45, %s2943_s25  ;;  %v2454_v46 = vpop.f32.mrb[39].mxu1 }
0x1325   : > { %v2506_v58 = vmax.f32 %v2502_v40, 0.0  ;;  %v2503_v59 = vadd.f32 %v2498_v56, %v2479_v36 }
0x1327   : > { %v2510_v61 = vadd.f32 %v2506_v58, %v2121_v57  ;;  %v2507_v1 = vmax.f32 %v2503_v59, 0.0 }
0x1329   : > { %v2511_v2 = vadd.f32 %v2507_v1, %v2122_v62  ;;  %2520 = vrot.lane.b32.xlu1 %v2510_v61, %s2943_s25 }
0x132b   : > { %2522 = vrot.lane.b32.xlu0 %v2511_v2, %s2943_s25 }
0x1393   : > { %v2517_v51 = vpop.permute.xlu1 %2516 }
0x1394   : > { %2529 = vst.msk [vmem:[%s386_s29] sm:$0xff] %vm2528_vm3, %v2517_v51 }
0x1395   : > { %v2519_v52 = vpop.permute.xlu0 %2518 }
0x1396   : > { %2530 = vst.msk [vmem:[%s386_s29 + $0x8] sm:$0xff] %vm2528_vm3, %v2519_v52 }
0x139b   : > { %v2521_v49 = vpop.permute.xlu1 %2520 }
0x139c   : > { %2531 = vst.msk [vmem:[%s386_s29 + $0x10] sm:$0xff] %vm2528_vm3, %v2521_v49 }
0x139d   : > { %v2523_v50 = vpop.permute.xlu0 %2522 }
0x139e   : > { %2532 = vst.msk [vmem:[%s386_s29 + $0x18] sm:$0xff] %vm2528_vm3, %v2523_v50 }
0x139f PF: > { %s21_s17 = sadd.s32 1, %s2923_s17  }
0x13a0   : > { %p18_p4 = scmp.ge.s32.totalorder %s21_s17, 6  }
0x13a2   :  { %20 = sbr.rel (!%p18_p4) target bundleno = 1 (0x1), region = 116 }

</bundles_post_ra>
